<compile_context>
chip_gen: v5e
topology: v5e:2x2
jax: 0.10.0
libtpu: 0.0.40
codegen_flags: <defaults>
</compile_context>

<pallas_src>
import functools

import jax
import jax.numpy as jnp
from jax.experimental import pallas as pl
from jax.experimental.pallas import tpu as pltpu


def _cdiv(a, b):
    return -(-a // b)


# ------------------------------------------------------------------
# Pallas kernel: fused  W2 @ relu(W1 @ x_tile + b1) + b2   (channels-first)
# ------------------------------------------------------------------
def _imageda_kernel(x_ref, w1_ref, b1_ref, w2_ref, b2_ref, out_ref):
    # x_ref : (C, T)       one tile of pixels, channels-first
    # w1_ref: (HID, C)     Conv1 weight (out, in), MXU dtype, resident across the grid
    # b1_ref: (HID, 1)     f32
    # w2_ref: (NOUT, HID)  Conv2 weight (out, in), MXU dtype, resident across the grid
    # b2_ref: (NOUT, 1)    f32
    # out_ref:(NOUT, T)    f32, lane-dense
    x = x_ref[...].astype(w1_ref.dtype)
    h = jnp.dot(w1_ref[...], x, preferred_element_type=jnp.float32)
    h = jnp.maximum(h + b1_ref[...], 0.0)          # bias + ReLU in f32 (v5e: no bf16 VPU)
    y = jnp.dot(w2_ref[...], h.astype(w2_ref.dtype),
                preferred_element_type=jnp.float32)
    out_ref[...] = (y + b2_ref[...]).astype(out_ref.dtype)


def _vmem_bytes(tile, c, hid, nout, x_bytes, w_bytes):
    # Double-buffered x / out blocks + intermediates (f32 h + cast copy) + weights/biases
    # (grid-invariant but double-buffered by default; counted conservatively).
    return (2 * tile * c * x_bytes
            + 2 * tile * nout * 4
            + tile * hid * (4 + w_bytes)
            + 2 * ((hid * c + nout * hid) * w_bytes + (hid + nout) * 4))


def _vmem_capacity_bytes():
    """Physical VMEM of the current chip (per TensorCore); conservative fallback."""
    try:
        cap = getattr(pltpu.get_tpu_info(), "vmem_capacity_bytes", None)
        if cap:
            return int(cap)
    except Exception:
        pass
    return 128 * 2**20  # v5e/v6e class


def _choose_tiling(hw, batch, c, hid, nout, x_bytes, w_bytes, max_tile, vmem_budget):
    """Pick (tile, n_tiles).

    Find the largest 128-multiple tile within the VMEM budget, take the minimum tile
    count it implies, then shrink the tile to the smallest 128-multiple that still
    covers hw in that many tiles (minimizes wasted columns on ragged H*W).  Tiny odd
    grids are bumped by one tile so batch * n_tiles is even (v7x megacore balance).
    """
    t_max = 128
    while (t_max + 128 <= max_tile
           and _vmem_bytes(t_max + 128, c, hid, nout, x_bytes, w_bytes) <= vmem_budget):
        t_max += 128
    n = _cdiv(hw, t_max)
    if (batch * n) % 2 == 1 and batch * n < 4 and hw > 128:
        n += 1                                     # keep both v7x TensorCores busy
    tile = 128 * _cdiv(_cdiv(hw, n), 128)
    tile = max(128, min(tile, t_max))
    return tile, _cdiv(hw, tile)


@functools.partial(jax.jit, static_argnames=("use_bf16_matmul",))
def image_da_forward(x_nchw, need_backprop, w1, b1, w2, b2, *, use_bf16_matmul=True):
    """Forward pass of _ImageDA.

    Args:
      x_nchw:        (B, C, H, W) feature map (f32 or bf16; bf16 halves HBM traffic)
      need_backprop: (B,) per-image domain label
      w1: (512, C)   Conv1 weight (out, in) -- PyTorch 1x1 conv weight squeezed
      b1: (512,)
      w2: (2, 512)   Conv2 weight (out, in)
      b2: (2,)
      use_bf16_matmul: run the two matmuls on the MXU in bf16 (f32 accumulate).  This is
        a deliberate deviation from PyTorch's f32 convs; set False for full f32.
    Returns:
      logits (B, 2, H, W) float32, label (B, H, W) int32
      (PyTorch returns int64 "long"; int32 is the TPU-friendly equivalent).
    """
    B, C, H, W = x_nchw.shape
    hid = w1.shape[0]          # 512
    nout = w2.shape[0]         # 2
    hw = H * W
    x_bytes = jnp.dtype(x_nchw.dtype).itemsize

    # grad_reverse is identity in the forward pass.
    # TODO(synk): GRL backward (grad * -0.1) needs a custom_vjp if training through this kernel.

    mxu_dtype = jnp.bfloat16 if use_bf16_matmul else jnp.float32
    w_bytes = jnp.dtype(mxu_dtype).itemsize

    # Generation-aware VMEM policy (v5e/v6e: 128 MiB, v7x: 64 MiB per TC).
    vmem_cap = _vmem_capacity_bytes()
    vmem_budget = min(56 * 2**20, max(16 * 2**20, int(0.35 * vmem_cap)))
    max_tile = 4096 if vmem_cap >= 96 * 2**20 else 2048

    tile, n_tiles = _choose_tiling(hw, B, C, hid, nout, x_bytes, w_bytes,
                                   max_tile, vmem_budget)

    # (B, C, H, W) -> (B, C, H*W): contiguous view, no data movement.  No padding pass:
    # the ragged final tile is handled by Pallas; its garbage columns never reach HBM.
    x_flat = x_nchw.reshape(B, C, hw)

    w1_m = w1.astype(mxu_dtype)
    w2_m = w2.astype(mxu_dtype)
    b1_2d = b1.astype(jnp.float32).reshape(hid, 1)
    b2_2d = b2.astype(jnp.float32).reshape(nout, 1)

    vmem_need = _vmem_bytes(tile, C, hid, nout, x_bytes, w_bytes)
    vmem_limit = int(min(int(0.70 * vmem_cap), max(32 * 2**20, 2 * vmem_need)))

    cost = pl.CostEstimate(
        flops=2 * B * hw * (C * hid + hid * nout),
        transcendentals=0,
        bytes_accessed=(B * hw * C * x_bytes + B * hw * nout * 4
                        + (hid * C + nout * hid) * w_bytes + (hid + nout) * 4),
    )

    out = pl.pallas_call(
        _imageda_kernel,
        out_shape=jax.ShapeDtypeStruct((B, nout, hw), jnp.float32),
        grid_spec=pltpu.PrefetchScalarGridSpec(
            num_scalar_prefetch=0,
            grid=(B, n_tiles),
            in_specs=[
                pl.BlockSpec((None, C, tile), lambda b, t: (b, 0, t)),   # x tile (C, T)
                pl.BlockSpec((hid, C), lambda b, t: (0, 0)),             # W1 (resident)
                pl.BlockSpec((hid, 1), lambda b, t: (0, 0)),             # b1
                pl.BlockSpec((nout, hid), lambda b, t: (0, 0)),          # W2 (resident)
                pl.BlockSpec((nout, 1), lambda b, t: (0, 0)),            # b2
            ],
            out_specs=pl.BlockSpec((None, nout, tile), lambda b, t: (b, 0, t)),
        ),
        compiler_params=pltpu.CompilerParams(
            dimension_semantics=("parallel", "parallel"),
            vmem_limit_bytes=vmem_limit,
        ),
        cost_estimate=cost,
    )(x_flat, w1_m, b1_2d, w2_m, b2_2d)

    logits_nchw = out.reshape(B, nout, H, W)

    # ImageLabelResizeLayer: nearest-resize of the per-image scalar label to (H, W).
    label = jnp.broadcast_to(need_backprop.astype(jnp.int32)[:, None, None], (B, H, W))
    return logits_nchw, label


def _reference(x, w1, b1, w2, b2):
    # Pure-JAX reference (1x1 convs == per-pixel dense), same bf16 matmul precision.
    x_bf = x.astype(jnp.bfloat16)
    w1_bf = w1.astype(jnp.bfloat16)
    w2_bf = w2.astype(jnp.bfloat16)
    h = jnp.maximum(
        jnp.einsum("bchw,oc->bohw", x_bf, w1_bf, preferred_element_type=jnp.float32)
        + b1[None, :, None, None], 0.0)
    return (jnp.einsum("bohw,no->bnhw", h.astype(jnp.bfloat16), w2_bf,
                       preferred_element_type=jnp.float32)
            + b2[None, :, None, None])


if __name__ == "__main__":
    key = jax.random.PRNGKey(0)
    B, C, H, W = 2, 4, 16, 16
    HID, NOUT = 512, 2

    k_x, k_w1, k_b1, k_w2, k_b2, k_x2 = jax.random.split(key, 6)
    x = jax.random.normal(k_x, (B, C, H, W), dtype=jnp.float32)
    need_backprop = jnp.array([1, 0], dtype=jnp.int32)

    # PyTorch Conv2d(kernel_size=1) weights squeezed to (out, in).
    w1 = jax.random.normal(k_w1, (HID, C), dtype=jnp.float32) * 0.05
    b1 = jax.random.normal(k_b1, (HID,), dtype=jnp.float32) * 0.05
    w2 = jax.random.normal(k_w2, (NOUT, HID), dtype=jnp.float32) * 0.05
    b2 = jax.random.normal(k_b2, (NOUT,), dtype=jnp.float32) * 0.05

    # --- Case 1: H*W divisible by 128 ------------------------------------------------
    logits, label = image_da_forward(x, need_backprop, w1, b1, w2, b2)
    jax.block_until_ready(logits)
    jax.block_until_ready(label)

    y_ref = _reference(x, w1, b1, w2, b2)
    assert logits.shape == (B, NOUT, H, W)
    assert label.shape == (B, H, W)
    err1 = float(jnp.max(jnp.abs(logits - y_ref)))
    assert jnp.allclose(logits, y_ref, atol=2e-2, rtol=2e-2), err1
    assert bool(jnp.all(label[0] == 1)) and bool(jnp.all(label[1] == 0))

    # --- Case 2: ragged H*W (130 pixels) + B=1 odd-grid megacore path ------------------
    B2, H2, W2 = 1, 10, 13
    x2 = jax.random.normal(k_x2, (B2, C, H2, W2), dtype=jnp.float32)
    nb2 = jnp.array([1], dtype=jnp.int32)
    logits2, label2 = image_da_forward(x2, nb2, w1, b1, w2, b2)
    jax.block_until_ready(logits2)
    jax.block_until_ready(label2)

    y_ref2 = _reference(x2, w1, b1, w2, b2)
    assert logits2.shape == (B2, NOUT, H2, W2)
    assert label2.shape == (B2, H2, W2)
    err2 = float(jnp.max(jnp.abs(logits2 - y_ref2)))
    assert jnp.allclose(logits2, y_ref2, atol=2e-2, rtol=2e-2), err2
    assert bool(jnp.all(label2 == 1))

    print("KERNEL_OK")
</pallas_src>

<mosaic_0001>
module attributes {stable_mosaic.version = 11 : i64} {
  func.func @_imageda_kernel(%arg0: i32, %arg1: i32, %arg2: memref<1x4x256xf32, #tpu.memory_space<vmem>>, %arg3: memref<512x4xbf16, #tpu.memory_space<vmem>>, %arg4: memref<512x1xf32, #tpu.memory_space<vmem>>, %arg5: memref<2x512xbf16, #tpu.memory_space<vmem>>, %arg6: memref<2x1xf32, #tpu.memory_space<vmem>>, %arg7: memref<1x2x256xf32, #tpu.memory_space<vmem>>) attributes {dimension_semantics = [#tpu.dimension_semantics<parallel>, #tpu.dimension_semantics<parallel>], iteration_bounds = array<i64: 2, 1>, scalar_prefetch = 0 : i64, scratch_operands = 0 : i64, tpu.core_type = #tpu.core_type<tc>, window_params = [{transform_indices = @transform_0, window_bounds = array<i64: 1, 4, 256>}, {pipeline_mode = #tpu.pipeline_mode<synchronous>, transform_indices = @transform_1, window_bounds = array<i64: 512, 4>}, {pipeline_mode = #tpu.pipeline_mode<synchronous>, transform_indices = @transform_2, window_bounds = array<i64: 512, 1>}, {pipeline_mode = #tpu.pipeline_mode<synchronous>, transform_indices = @transform_3, window_bounds = array<i64: 2, 512>}, {pipeline_mode = #tpu.pipeline_mode<synchronous>, transform_indices = @transform_4, window_bounds = array<i64: 2, 1>}, {transform_indices = @transform_5, window_bounds = array<i64: 1, 2, 256>}]} {
    %c0 = arith.constant 0 : index
    %c0_0 = arith.constant 0 : index
    %c0_1 = arith.constant 0 : index
    %0 = vector.load %arg2[%c0, %c0_0, %c0_1] : memref<1x4x256xf32, #tpu.memory_space<vmem>>, vector<1x4x256xf32>
    %1 = vector.shape_cast %0 : vector<1x4x256xf32> to vector<4x256xf32>
    %2 = arith.truncf %1 : vector<4x256xf32> to vector<4x256xbf16>
    %c0_2 = arith.constant 0 : index
    %c0_3 = arith.constant 0 : index
    %3 = vector.load %arg3[%c0_2, %c0_3] : memref<512x4xbf16, #tpu.memory_space<vmem>>, vector<512x4xbf16>
    %cst = arith.constant dense<0.000000e+00> : vector<512x256xf32>
    %4 = tpu.matmul %3, %2, %cst {dimension_numbers = #tpu.dot_dimension_numbers<[1], [0], [0], [1], [0, 0, 1, 1], [], []>} : vector<512x4xbf16>, vector<4x256xbf16>, vector<512x256xf32> -> vector<512x256xf32>
    %c0_4 = arith.constant 0 : index
    %c0_5 = arith.constant 0 : index
    %5 = vector.load %arg4[%c0_4, %c0_5] : memref<512x1xf32, #tpu.memory_space<vmem>>, vector<512x1xf32>
    %6 = vector.broadcast %5 : vector<512x1xf32> to vector<512x256xf32>
    %7 = arith.addf %4, %6 : vector<512x256xf32>
    %cst_6 = arith.constant 0.000000e+00 : f32
    %8 = vector.broadcast %cst_6 : f32 to vector<512x256xf32>
    %9 = arith.maximumf %7, %8 : vector<512x256xf32>
    %c0_7 = arith.constant 0 : index
    %c0_8 = arith.constant 0 : index
    %10 = vector.load %arg5[%c0_7, %c0_8] : memref<2x512xbf16, #tpu.memory_space<vmem>>, vector<2x512xbf16>
    %11 = arith.truncf %9 : vector<512x256xf32> to vector<512x256xbf16>
    %cst_9 = arith.constant dense<0.000000e+00> : vector<2x256xf32>
    %12 = tpu.matmul %10, %11, %cst_9 {dimension_numbers = #tpu.dot_dimension_numbers<[1], [0], [0], [1], [0, 0, 1, 1], [], []>} : vector<2x512xbf16>, vector<512x256xbf16>, vector<2x256xf32> -> vector<2x256xf32>
    %c0_10 = arith.constant 0 : index
    %c0_11 = arith.constant 0 : index
    %13 = vector.load %arg6[%c0_10, %c0_11] : memref<2x1xf32, #tpu.memory_space<vmem>>, vector<2x1xf32>
    %14 = vector.broadcast %13 : vector<2x1xf32> to vector<2x256xf32>
    %15 = arith.addf %12, %14 : vector<2x256xf32>
    %c0_12 = arith.constant 0 : index
    %c0_13 = arith.constant 0 : index
    %c0_14 = arith.constant 0 : index
    %16 = vector.load %arg7[%c0_12, %c0_13, %c0_14] : memref<1x2x256xf32, #tpu.memory_space<vmem>>, vector<1x2x256xf32>
    %17 = vector.shape_cast %16 : vector<1x2x256xf32> to vector<2x256xf32>
    %18 = vector.shape_cast %15 : vector<2x256xf32> to vector<1x2x256xf32>
    tpu.vector_store %arg7[%c0_12, %c0_13, %c0_14], %18 {strides = array<i32>} : memref<1x2x256xf32, #tpu.memory_space<vmem>>, vector<1x2x256xf32>,
    return
  }
  func.func @transform_0(%arg0: i32, %arg1: i32) -> (i32, i32, i32) {
    %c0_i32 = arith.constant 0 : i32
    %c0_i32_0 = arith.constant 0 : i32
    return %arg0, %c0_i32, %arg1 : i32, i32, i32
  }
  func.func @transform_1(%arg0: i32, %arg1: i32) -> (i32, i32) {
    %c0_i32 = arith.constant 0 : i32
    %c0_i32_0 = arith.constant 0 : i32
    %c0_i32_1 = arith.constant 0 : i32
    return %c0_i32, %c0_i32_0 : i32, i32
  }
  func.func @transform_2(%arg0: i32, %arg1: i32) -> (i32, i32) {
    %c0_i32 = arith.constant 0 : i32
    %c0_i32_0 = arith.constant 0 : i32
    %c0_i32_1 = arith.constant 0 : i32
    return %c0_i32, %c0_i32_0 : i32, i32
  }
  func.func @transform_3(%arg0: i32, %arg1: i32) -> (i32, i32) {
    %c0_i32 = arith.constant 0 : i32
    %c0_i32_0 = arith.constant 0 : i32
    %c0_i32_1 = arith.constant 0 : i32
    return %c0_i32, %c0_i32_0 : i32, i32
  }
  func.func @transform_4(%arg0: i32, %arg1: i32) -> (i32, i32) {
    %c0_i32 = arith.constant 0 : i32
    %c0_i32_0 = arith.constant 0 : i32
    %c0_i32_1 = arith.constant 0 : i32
    return %c0_i32, %c0_i32_0 : i32, i32
  }
  func.func @transform_5(%arg0: i32, %arg1: i32) -> (i32, i32, i32) {
    %c0_i32 = arith.constant 0 : i32
    %c0_i32_0 = arith.constant 0 : i32
    return %arg0, %c0_i32, %arg1 : i32, i32, i32
  }
}

</mosaic_0001>

<bundles_post_ra>
// kernel: image_da_forward.1
= control target key start
LH: loop header
LB: loop body
LE: loop exit
PB: predicated region body
PF: predicated region fallthrough
CT: control target
= control target key end

     0   :  { %s2052_s18 = smov 0   ;;  %s2054_s19 = smov 0   ;;  %s2947_s0 = inlined_call_operand.vmem [shape: f32[2,4,256], index: 0, kind: input, shape index: {}]   ;;  %s2948_s1 = inlined_call_operand.vmem [shape: bf16[512,4], index: 1, kind: input, shape index: {}]   ;;  %s2949_s2 = inlined_call_operand.vmem [shape: f32[512,1], index: 2, kind: input, shape index: {}]   ;;  %s2950_s3 = inlined_call_operand.vmem [shape: bf16[2,512], index: 3, kind: input, shape index: {}]   ;;  %s2951_s4 = inlined_call_operand.vmem [shape: f32[2,1], index: 4, kind: input, shape index: {}]   ;;  %s2952_s5 = inlined_call_operand.vmem [shape: f32[2,2,256], index: 5, kind: output, shape index: {}]  }
   0x1   :  { %s2056_s20 = smov 0  }
   0x2 LB: > { %s27_s21 = sadd.s32 1, %s2015_s19  ;;  %p1734_p0 = scmp.ge.s32.totalorder %s2019_s20, 1  ;;  %s2019_s20 = sphi %s2056_s20, %s15_s20   ;;  %s2015_s19 = sphi %s2054_s19, %s3079_s19   ;;  %s2011_s18 = sphi %s2052_s18, %s3078_s18  }
   0x3   : > { %p29_p1 = scmp.ge.s32.totalorder %s27_s21, 2  ;;  %p208_p2 = scmp.lt.s32.totalorder %s2019_s20, 3 }
   0x5   : > { %s3081_s21 = smov (%p29_p1, %s27_s21), 0  ;;  %p209_p3 = pnand %p1734_p0, %p208_p2 }
   0x7   : > { %212 = sbr.rel (%p209_p3) target bundleno = 695 (0x2b7), region = 40 }
   0xc   : > { %p245_p4 = scmp.lt.s32.totalorder %s2011_s18, 1  ;;  %v338_v0 = vld [vmem:[%s2949_s2] sm:$0xff]  ;;  %v2021_v1 = vmov 0   ;;  %v340_v2 = vld [vmem:[%s2949_s2 + $0x10] sm:$0xff]  ;;  %v339_v4 = vld [vmem:[%s2949_s2 + $0x8] sm:$0xff]  ;;  %vm979_vm0 = vcmask 1041408  }
   0xd   : > { %1994 = vset.pattern.permute.xlu0 %v2021_v1  ;;  %1995 = vset.pattern.permute.xlu1 %v2021_v1  ;;  %v341_v5 = vld [vmem:[%s2949_s2 + $0x18] sm:$0xff]  ;;  %v1452_v6 = vld [vmem:[%s2950_s3] sm:$0xf]  ;;  %v344_v15 = vld [vmem:[%s2949_s2 + $0x30] sm:$0xff]  ;;  %vm882_vm1 = vcmask 31744  }
   0xe   : > { %s3083_s18 = smov (!%p245_p4, %s2011_s18), 1  ;;  %404 = vperm.xlu0 %1994, %v338_v0   ;;  %414 = vperm.xlu1 %1995, %v340_v2   ;;  %v1935_v13 = vld [vmem:[%s2948_s1] sm:$0xff]  ;;  %v345_v14 = vld [vmem:[%s2949_s2 + $0x38] sm:$0xff]  ;;  %v348_v18 = vld [vmem:[%s2949_s2 + $0x50] sm:$0xff] }
   0xf   : > { %s1933_s26 = sshll.u32 %s3083_s18, 3  ;;  %1996 = vset.pattern.permute.xlu2 %v2021_v1  ;;  %v1955_v16 = vld [vmem:[%s2948_s1 + $0xa0] sm:$0xff]  ;;  %v347_v19 = vld [vmem:[%s2949_s2 + $0x48] sm:$0xff]  ;;  %v353_v27 = vld [vmem:[%s2949_s2 + $0x78] sm:$0xff]  ;;  %s1934_s8 = sshll.u32 %s3083_s18, 2 }
  0x10   : > { %s252_s29 = scalar_lea.vmem %s2947_s0, %s1933_s26  ;;  %v342_v17 = vld [vmem:[%s2949_s2 + $0x20] sm:$0xff]  ;;  %v343_v20 = vld [vmem:[%s2949_s2 + $0x28] sm:$0xff]  ;;  %v349_v28 = vld [vmem:[%s2949_s2 + $0x58] sm:$0xff]  ;;  %s262_s11 = scalar_lea.vmem %s2952_s5, %s1934_s8 }
  0x11   : > { %v265_v3 = vld [vmem:[%s252_s29] sm:$0xff]  ;;  %424 = vperm.xlu2 %1996, %v342_v17   ;;  %v1936_v21 = vld [vmem:[%s2948_s1 + $0x8] sm:$0xff]  ;;  %v1937_v29 = vld [vmem:[%s2948_s1 + $0x10] sm:$0xff] }
  0x12   : > { %267 = vst [vmem:[#allocation1] ss:$2 sm:$0xff] %v265_v3  ;;  %v351_v22 = vld [vmem:[%s2949_s2 + $0x68] sm:$0xff]  ;;  %v350_v23 = vld [vmem:[%s2949_s2 + $0x60] sm:$0xff]  ;;  %v357_v30 = vld [vmem:[%s2949_s2 + $0x98] sm:$0xff] }
  0x13   : > { %v1956_v24 = vld [vmem:[%s2948_s1 + $0xa8] sm:$0xff]  ;;  %v346_v25 = vld [vmem:[%s2949_s2 + $0x40] sm:$0xff]  ;;  %v356_v31 = vld [vmem:[%s2949_s2 + $0x90] sm:$0xff] }
  0x14   : > { %v354_v26 = vld [vmem:[%s2949_s2 + $0x80] sm:$0xff]  ;;  %v1957_v32 = vld [vmem:[%s2948_s1 + $0xb0] sm:$0xff]  ;;  %v359_v35 = vld [vmem:[%s2949_s2 + $0xa8] sm:$0xff] }
  0x15   : > { %v352_v33 = vld [vmem:[%s2949_s2 + $0x70] sm:$0xff]  ;;  %v355_v36 = vld [vmem:[%s2949_s2 + $0x88] sm:$0xff]  ;;  %v1938_v37 = vld [vmem:[%s2948_s1 + $0x18] sm:$0xff] }
  0x16   : > { %409 = vperm.xlu0 %1994, %v339_v4   ;;  %419 = vperm.xlu1 %1995, %v341_v5   ;;  %v368_v34 = vld [vmem:[%s2949_s2 + $0xf0] sm:$0xff]  ;;  %v367_v38 = vld [vmem:[%s2949_s2 + $0xe8] sm:$0xff]  ;;  %v366_v39 = vld [vmem:[%s2949_s2 + $0xe0] sm:$0xff] }
  0x17   : > { %v1958_v40 = vld [vmem:[%s2948_s1 + $0xb8] sm:$0xff]  ;;  %v358_v41 = vld [vmem:[%s2949_s2 + $0xa0] sm:$0xff]  ;;  %v360_v47 = vld [vmem:[%s2949_s2 + $0xb0] sm:$0xff] }
  0x18   : > { %v362_v42 = vld [vmem:[%s2949_s2 + $0xc0] sm:$0xff]  ;;  %v365_v43 = vld [vmem:[%s2949_s2 + $0xd8] sm:$0xff]  ;;  %v364_v49 = vld [vmem:[%s2949_s2 + $0xd0] sm:$0xff] }
  0x19   : > { %v268_v7 = vld.sshfl [vmem:[#allocation1] sm:$0xff pattern:$0x75316420]  ;;  %v269_v8 = vld.sshfl [vmem:[#allocation1 + $0x8] sm:$0xff pattern:$0x75316420]  ;;  %429 = vperm.xlu2 %1996, %v343_v20  }
  0x1a   : > { %v272_v9 = vpack.c.bf16 %v268_v7, %v268_v7  ;;  %v273_v10 = vpack.c.bf16 %v269_v8, %v269_v8  ;;  %1524 = vst [vmem:[#allocation1] ss:$9 sm:$0xff] %v1452_v6  ;;  %v369_v44 = vld [vmem:[%s2949_s2 + $0xf8] sm:$0xff]  ;;  %v1939_v45 = vld [vmem:[%s2948_s1 + $0x20] sm:$0xff]  ;;  %v400_v50 = vld [vmem:[%s2949_s2 + $0x1f0] sm:$0xff] }
  0x1b   : > { %v361_v46 = vld [vmem:[%s2949_s2 + $0xb8] sm:$0xff]  ;;  %v1959_v48 = vld [vmem:[%s2948_s1 + $0xc0] sm:$0xff]  ;;  %v363_v52 = vld [vmem:[%s2949_s2 + $0xc8] sm:$0xff] }
  0x1c   : > { %v981_v11 = vsel %vm979_vm0, %v272_v9, 0  ;;  %v984_v12 = vsel %vm979_vm0, %v273_v10, 0  ;;  %v385_v51 = vld [vmem:[%s2949_s2 + $0x178] sm:$0xff]  ;;  %v1940_v53 = vld [vmem:[%s2948_s1 + $0x28] sm:$0xff]  ;;  %v382_v55 = vld [vmem:[%s2949_s2 + $0x160] sm:$0xff] }
  0x1d   : > { %993 = vmatpush.bf16.msra.mxu0 %v981_v11  ;;  %1162 = vmatpush.bf16.msra.mxu1 %v984_v12  ;;  %v383_v54 = vld [vmem:[%s2949_s2 + $0x168] sm:$0xff]  ;;  %v384_v57 = vld [vmem:[%s2949_s2 + $0x170] sm:$0xff]  ;;  %v401_v60 = vld [vmem:[%s2949_s2 + $0x1f8] sm:$0xff] }
  0x1e   : > { %1967 = vmatpush.bf16.msra.mxu2 %v981_v11  ;;  %1968 = vmatpush.bf16.msra.mxu3 %v984_v12  ;;  %v1960_v56 = vld [vmem:[%s2948_s1 + $0xc8] sm:$0xff]  ;;  %v380_v58 = vld [vmem:[%s2949_s2 + $0x150] sm:$0xff]  ;;  %v397_v62 = vld [vmem:[%s2949_s2 + $0x1d8] sm:$0xff] }
  0x1f   : > { %439 = vperm.xlu1 %1995, %v345_v14   ;;  %434 = vperm.xlu0 %1994, %v344_v15   ;;  %v399_v59 = vld [vmem:[%s2949_s2 + $0x1e8] sm:$0xff]  ;;  %v1941_v61 = vld [vmem:[%s2948_s1 + $0x30] sm:$0xff]  ;;  %v398_v4 = vld [vmem:[%s2949_s2 + $0x1e0] sm:$0xff] }
  0x20   : > { %1867 = vmatmul.msk.bf16.vlgmr.msra.gmra.mxu0 %vm882_vm1, %v1935_v13  ;;  %1899 = vmatmul.msk.bf16.vlgmr.msra.gmra.mxu1 %vm882_vm1, %v1935_v13  ;;  %v396_v63 = vld [vmem:[%s2949_s2 + $0x1d0] sm:$0xff]  ;;  %v394_v5 = vld [vmem:[%s2949_s2 + $0x1c0] sm:$0xff]  ;;  %v379_v6 = vld [vmem:[%s2949_s2 + $0x148] sm:$0xff] }
  0x21   : > { %1887 = vmatmul.msk.bf16.vlgmr.msra.gmra.mxu2 %vm882_vm1, %v1955_v16  ;;  %1919 = vmatmul.msk.bf16.vlgmr.msra.gmra.mxu3 %vm882_vm1, %v1955_v16  ;;  %v1961_v1 = vld [vmem:[%s2948_s1 + $0xd0] sm:$0xff]  ;;  %v381_v8 = vld [vmem:[%s2949_s2 + $0x158] sm:$0xff]  ;;  %v378_v16 = vld [vmem:[%s2949_s2 + $0x140] sm:$0xff] }
  0x22   : > { %444 = vperm.xlu2 %1996, %v346_v25   ;;  %v1942_v11 = vld [vmem:[%s2948_s1 + $0x38] sm:$0xff]  ;;  %v376_v13 = vld [vmem:[%s2949_s2 + $0x130] sm:$0xff]  ;;  %v1943_v25 = vld [vmem:[%s2948_s1 + $0x40] sm:$0xff] }
  0x23   : > { %v377_v12 = vld [vmem:[%s2949_s2 + $0x138] sm:$0xff] }
  0x24   : > { %v1962_v15 = vld [vmem:[%s2948_s1 + $0xd8] sm:$0xff] }
  0x25   : > { %v393_v20 = vld [vmem:[%s2949_s2 + $0x1b8] sm:$0xff] }
  0x27   : > { %454 = vperm.xlu1 %1995, %v348_v18   ;;  %449 = vperm.xlu0 %1994, %v347_v19   ;;  %v374_v19 = vld [vmem:[%s2949_s2 + $0x120] sm:$0xff] }
  0x2a   : > { %459 = vperm.xlu2 %1996, %v349_v28  }
  0x2f   : > { %469 = vperm.xlu1 %1995, %v351_v22   ;;  %464 = vperm.xlu0 %1994, %v350_v23   ;;  %v395_v22 = vld [vmem:[%s2949_s2 + $0x1c8] sm:$0xff] }
  0x30   : > { %1868 = vmatmul.msk.bf16.gmra.mxu0 %vm882_vm1, %v1936_v21  ;;  %1900 = vmatmul.msk.bf16.gmra.mxu1 %vm882_vm1, %v1936_v21 }
  0x31   : > { %1888 = vmatmul.msk.bf16.gmra.mxu2 %vm882_vm1, %v1956_v24  ;;  %1920 = vmatmul.msk.bf16.gmra.mxu3 %vm882_vm1, %v1956_v24 }
  0x32   : > { %474 = vperm.xlu2 %1996, %v352_v33  }
  0x37   : > { %484 = vperm.xlu1 %1995, %v354_v26   ;;  %479 = vperm.xlu0 %1994, %v353_v27   ;;  %v391_v26 = vld [vmem:[%s2949_s2 + $0x1a8] sm:$0xff]  ;;  %v390_v27 = vld [vmem:[%s2949_s2 + $0x1a0] sm:$0xff] }
  0x3a   : > { %489 = vperm.xlu2 %1996, %v355_v36  }
  0x3f   : > { %499 = vperm.xlu1 %1995, %v357_v30   ;;  %494 = vperm.xlu0 %1994, %v356_v31   ;;  %v1963_v31 = vld [vmem:[%s2948_s1 + $0xe0] sm:$0xff] }
  0x40   : > { %1869 = vmatmul.msk.bf16.gmra.mxu0 %vm882_vm1, %v1937_v29  ;;  %1901 = vmatmul.msk.bf16.gmra.mxu1 %vm882_vm1, %v1937_v29 }
  0x41   : > { %1889 = vmatmul.msk.bf16.gmra.mxu2 %vm882_vm1, %v1957_v32  ;;  %1921 = vmatmul.msk.bf16.gmra.mxu3 %vm882_vm1, %v1957_v32 }
  0x42   : > { %504 = vperm.xlu2 %1996, %v358_v41  }
  0x47   : > { %554 = vperm.xlu1 %1995, %v368_v34   ;;  %509 = vperm.xlu0 %1994, %v359_v35   ;;  %v392_v34 = vld [vmem:[%s2949_s2 + $0x1b0] sm:$0xff] }
  0x4a   : > { %559 = vperm.xlu2 %1996, %v369_v44  }
  0x4f   : > { %549 = vperm.xlu1 %1995, %v367_v38   ;;  %544 = vperm.xlu0 %1994, %v366_v39   ;;  %v388_v39 = vld [vmem:[%s2949_s2 + $0x190] sm:$0xff] }
  0x50   : > { %1870 = vmatmul.msk.bf16.gmra.mxu0 %vm882_vm1, %v1938_v37  ;;  %1902 = vmatmul.msk.bf16.gmra.mxu1 %vm882_vm1, %v1938_v37 }
  0x51   : > { %1890 = vmatmul.msk.bf16.gmra.mxu2 %vm882_vm1, %v1958_v40  ;;  %1922 = vmatmul.msk.bf16.gmra.mxu3 %vm882_vm1, %v1958_v40  ;;  %v373_v40 = vld [vmem:[%s2949_s2 + $0x118] sm:$0xff] }
  0x52   : > { %534 = vperm.xlu2 %1996, %v364_v49  }
  0x57   : > { %524 = vperm.xlu1 %1995, %v362_v42   ;;  %539 = vperm.xlu0 %1994, %v365_v43  }
  0x5a   : > { %529 = vperm.xlu2 %1996, %v363_v52  }
  0x5f   : > { %519 = vperm.xlu1 %1995, %v361_v46   ;;  %514 = vperm.xlu0 %1994, %v360_v47   ;;  %v375_v46 = vld [vmem:[%s2949_s2 + $0x128] sm:$0xff] }
  0x60   : > { %1871 = vmatmul.msk.bf16.gmra.mxu0 %vm882_vm1, %v1939_v45  ;;  %1903 = vmatmul.msk.bf16.gmra.mxu1 %vm882_vm1, %v1939_v45 }
  0x61   : > { %1891 = vmatmul.msk.bf16.gmra.mxu2 %vm882_vm1, %v1959_v48  ;;  %1923 = vmatmul.msk.bf16.gmra.mxu3 %vm882_vm1, %v1959_v48 }
  0x62   : > { %634 = vperm.xlu2 %1996, %v384_v57  }
  0x67   : > { %714 = vperm.xlu1 %1995, %v400_v50   ;;  %639 = vperm.xlu0 %1994, %v385_v51  }
  0x6a   : > { %719 = vperm.xlu2 %1996, %v401_v60  }
  0x6b   : > { %v2270_v0 = vpop.permute.xlu2 %424 }
  0x6f   : > { %629 = vperm.xlu1 %1995, %v383_v54   ;;  %624 = vperm.xlu0 %1994, %v382_v55   ;;  %v1944_v54 = vld [vmem:[%s2948_s1 + $0x48] sm:$0xff] }
  0x70   : > { %1872 = vmatmul.msk.bf16.gmra.mxu0 %vm882_vm1, %v1940_v53  ;;  %1904 = vmatmul.msk.bf16.gmra.mxu1 %vm882_vm1, %v1940_v53  ;;  %v371_v55 = vld [vmem:[%s2949_s2 + $0x108] sm:$0xff] }
  0x71   : > { %1892 = vmatmul.msk.bf16.gmra.mxu2 %vm882_vm1, %v1960_v56  ;;  %1924 = vmatmul.msk.bf16.gmra.mxu3 %vm882_vm1, %v1960_v56  ;;  %v370_v56 = vld [vmem:[%s2949_s2 + $0x100] sm:$0xff] }
  0x72   : > { %704 = vperm.xlu2 %1996, %v398_v4  }
  0x73   : > { %v2290_v7 = vpop.permute.xlu2 %429 }
  0x77   : > { %614 = vperm.xlu1 %1995, %v380_v58   ;;  %709 = vperm.xlu0 %1994, %v399_v59   ;;  %v1964_v59 = vld [vmem:[%s2948_s1 + $0xe8] sm:$0xff] }
  0x7a   : > { %619 = vperm.xlu2 %1996, %v381_v8  }
  0x7c   : > { %v2306_v14 = vpop.permute.xlu2 %444 }
  0x7f   : > { %699 = vperm.xlu1 %1995, %v397_v62   ;;  %694 = vperm.xlu0 %1994, %v396_v63   ;;  %v372_v63 = vld [vmem:[%s2949_s2 + $0x110] sm:$0xff] }
  0x80   : > { %1873 = vmatmul.msk.bf16.gmra.mxu0 %vm882_vm1, %v1941_v61  ;;  %1905 = vmatmul.msk.bf16.gmra.mxu1 %vm882_vm1, %v1941_v61  ;;  %v405_v2 = vpop.permute.xlu0 %404  ;;  %v2277_v3 = vpop.permute.xlu1 %414 }
  0x81   : > { %1893 = vmatmul.msk.bf16.gmra.mxu2 %vm882_vm1, %v1961_v1  ;;  %1925 = vmatmul.msk.bf16.gmra.mxu3 %vm882_vm1, %v1961_v1 }
  0x82   : > { %604 = vperm.xlu2 %1996, %v378_v16  }
  0x84   : > { %v2328_v21 = vpop.permute.xlu2 %459 }
  0x87   : > { %684 = vperm.xlu1 %1995, %v394_v5   ;;  %609 = vperm.xlu0 %1994, %v379_v6   ;;  %v1517_v5 = vld [vmem:[%s2951_s4] sm:$0x3]  ;;  %v387_v6 = vld [vmem:[%s2949_s2 + $0x188] sm:$0xff] }
  0x88   : > { %v410_v9 = vpop.permute.xlu0 %409  ;;  %v2295_v10 = vpop.permute.xlu1 %419 }
  0x8a   : > { %689 = vperm.xlu2 %1996, %v395_v22  }
  0x8c   : > { %v2346_v28 = vpop.permute.xlu2 %474 }
  0x8f   : > { %599 = vperm.xlu1 %1995, %v377_v12   ;;  %594 = vperm.xlu0 %1994, %v376_v13  }
  0x90   : > { %1874 = vmatmul.msk.bf16.gmra.mxu0 %vm882_vm1, %v1942_v11  ;;  %1906 = vmatmul.msk.bf16.gmra.mxu1 %vm882_vm1, %v1942_v11 }
  0x91   : > { %1894 = vmatmul.msk.bf16.gmra.mxu2 %vm882_vm1, %v1962_v15  ;;  %1926 = vmatmul.msk.bf16.gmra.mxu3 %vm882_vm1, %v1962_v15  ;;  %v2318_v17 = vpop.permute.xlu1 %439  ;;  %v2320_v18 = vpop.permute.xlu0 %434  ;;  %v389_v15 = vld [vmem:[%s2949_s2 + $0x198] sm:$0xff] }
  0x92   : > { %674 = vperm.xlu2 %1996, %v392_v34  }
  0x94   : > { %v2374_v45 = vpop.permute.xlu2 %489 }
  0x97   : > { %584 = vperm.xlu1 %1995, %v374_v19   ;;  %679 = vperm.xlu0 %1994, %v393_v20  }
  0x99   : > { %v2333_v23 = vpop.permute.xlu1 %454  ;;  %v2335_v24 = vpop.permute.xlu0 %449 }
  0x9a   : > { %589 = vperm.xlu2 %1996, %v375_v46  }
  0x9c   : > { %v2405_v62 = vpop.permute.xlu2 %504 }
  0x9d   : > { %v995_v29 = vpop.f32.mrf.mxu0  ;;  %v1164_v30 = vpop.f32.mrf.mxu1  ;;  %2984 = vst [vmem:[#allocation5_spill] sm:$0xff] %v2405_v62 }
  0x9e   : > { %v996_v32 = vadd.f32 %v995_v29, %v405_v2  ;;  %v2351_v33 = vadd.f32 %v1164_v30, %v405_v2  ;;  %v1945_v30 = vld [vmem:[%s2948_s1 + $0x50] sm:$0xff] }
  0x9f   : > { %669 = vperm.xlu1 %1995, %v391_v26   ;;  %664 = vperm.xlu0 %1994, %v390_v27  }
  0xa0   : > { %1875 = vmatmul.msk.bf16.gmra.mxu0 %vm882_vm1, %v1943_v25  ;;  %1907 = vmatmul.msk.bf16.gmra.mxu1 %vm882_vm1, %v1943_v25  ;;  %v1324_v47 = vmax.f32 %v996_v32, 0.0  ;;  %v1325_v20 = vmax.f32 %v2351_v33, 0.0  ;;  %v1965_v33 = vld [vmem:[%s2948_s1 + $0xf0] sm:$0xff] }
  0xa1   : > { %1895 = vmatmul.msk.bf16.gmra.mxu2 %vm882_vm1, %v1963_v31  ;;  %1927 = vmatmul.msk.bf16.gmra.mxu3 %vm882_vm1, %v1963_v31  ;;  %v2360_v35 = vpop.permute.xlu1 %469  ;;  %v2362_v36 = vpop.permute.xlu0 %464 }
  0xa2   : > { %574 = vperm.xlu2 %1996, %v372_v63  }
  0xa4   : > { %v2364_v37 = vpop.f32.mrf.mxu2  ;;  %v2366_v38 = vpop.f32.mrf.mxu3 }
  0xa5   : > { %2981 = vst [vmem:[#allocation2_spill] sm:$0xff] %v2364_v37  ;;  %v997_v41 = vpop.f32.mrf.mxu0  ;;  %v1166_v42 = vpop.f32.mrf.mxu1 }
  0xa6   : > { %v998_v43 = vadd.f32 %v997_v41, %v410_v9  ;;  %v1167_v44 = vadd.f32 %v1166_v42, %v410_v9  ;;  %v2430_v13 = vpop.permute.xlu2 %559  ;;  %v386_v42 = vld [vmem:[%s2949_s2 + $0x180] sm:$0xff] }
  0xa7   : > { %654 = vperm.xlu1 %1995, %v388_v39   ;;  %579 = vperm.xlu0 %1994, %v373_v40   ;;  %2988 = vst [vmem:[#allocation9_spill] sm:$0xff] %v2430_v13 }
  0xa8   : > { %v1326_v48 = vmax.f32 %v998_v43, 0.0  ;;  %v1327_v22 = vmax.f32 %v1167_v44, 0.0 }
  0xa9   : > { %v2379_v49 = vpop.permute.xlu1 %484  ;;  %v2381_v50 = vpop.permute.xlu0 %479 }
  0xaa   : > { %v2383_v51 = vpack.c.bf16 %v1326_v48, %v1324_v47  ;;  %659 = vperm.xlu2 %1996, %v389_v15   ;;  %v2452_v34 = vpack.c.bf16 %v1327_v22, %v1325_v20 }
  0xac   : > { %2982 = vst [vmem:[#allocation3_spill] sm:$0xff] %v2383_v51  ;;  %v2385_v52 = vpop.f32.mrf.mxu2  ;;  %v2387_v53 = vpop.f32.mrf.mxu3 }
  0xad   : > { %2983 = vst [vmem:[#allocation4_spill] sm:$0xff] %v2385_v52  ;;  %v1000_v57 = vpop.f32.mrf.mxu0  ;;  %v1169_v58 = vpop.f32.mrf.mxu1 }
  0xae   : > { %v1001_v60 = vadd.f32 %v1000_v57, %v2277_v3  ;;  %v2403_v61 = vadd.f32 %v1169_v58, %v2277_v3  ;;  %2993 = vst [vmem:[#allocation14_spill] sm:$0xff] %v2452_v34  ;;  %v2456_v41 = vpop.permute.xlu2 %534 }
  0xaf   : > { %569 = vperm.xlu1 %1995, %v371_v55   ;;  %564 = vperm.xlu0 %1994, %v370_v56   ;;  %2994 = vst [vmem:[#allocation15_spill] sm:$0xff] %v2456_v41 }
  0xb0   : > { %1876 = vmatmul.msk.bf16.gmra.mxu0 %vm882_vm1, %v1944_v54  ;;  %1908 = vmatmul.msk.bf16.gmra.mxu1 %vm882_vm1, %v1944_v54  ;;  %v1328_v16 = vmax.f32 %v1001_v60, 0.0 }
  0xb1   : > { %1896 = vmatmul.msk.bf16.gmra.mxu2 %vm882_vm1, %v1964_v59  ;;  %1928 = vmatmul.msk.bf16.gmra.mxu3 %vm882_vm1, %v1964_v59  ;;  %v2414_v1 = vpop.permute.xlu1 %499  ;;  %v2416_v2 = vpop.permute.xlu0 %494  ;;  %v1329_v59 = vmax.f32 %v2403_v61, 0.0  ;;  %v1966_v61 = vld [vmem:[%s2948_s1 + $0xf8] sm:$0xff] }
  0xb2   : > { %2985 = vst [vmem:[#allocation6_spill] sm:$0xff] %v2414_v1  ;;  %644 = vperm.xlu2 %1996, %v386_v42  }
  0xb3   : > { %2986 = vst [vmem:[#allocation7_spill] sm:$0xff] %v2416_v2 }
  0xb4   : > { %v2418_v3 = vpop.f32.mrf.mxu2  ;;  %v2420_v4 = vpop.f32.mrf.mxu3 }
  0xb5   : > { %2987 = vst [vmem:[#allocation8_spill] sm:$0xff] %v2418_v3  ;;  %v1002_v8 = vpop.f32.mrf.mxu0  ;;  %v1171_v9 = vpop.f32.mrf.mxu1 }
  0xb6   : > { %v1003_v11 = vadd.f32 %v1002_v8, %v2295_v10  ;;  %v1172_v12 = vadd.f32 %v1171_v9, %v2295_v10  ;;  %v2475_v56 = vpop.permute.xlu2 %529 }
  0xb7   : > { %1520 = vperm.xlu1 %1995, %v1517_v5   ;;  %649 = vperm.xlu0 %1994, %v387_v6   ;;  %2998 = vst [vmem:[#allocation19_spill] sm:$0xff] %v2475_v56 }
  0xb8   : > { %v1330_v19 = vmax.f32 %v1003_v11, 0.0  ;;  %v1331_v60 = vmax.f32 %v1172_v12, 0.0 }
  0xb9   : > { %v2436_v25 = vpop.permute.xlu1 %554  ;;  %v2438_v26 = vpop.permute.xlu0 %509 }
  0xba   : > { %2989 = vst [vmem:[#allocation10_spill] sm:$0xff] %v2436_v25  ;;  %v2440_v27 = vpack.c.bf16 %v1330_v19, %v1328_v16  ;;  %v2494_v12 = vpack.c.bf16 %v1331_v60, %v1329_v59 }
  0xbb   : > { %2990 = vst [vmem:[#allocation11_spill] sm:$0xff] %v2438_v26 }
  0xbc   : > { %2991 = vst [vmem:[#allocation12_spill] sm:$0xff] %v2440_v27  ;;  %v2442_v10 = vpop.f32.mrf.mxu2  ;;  %v2444_v29 = vpop.f32.mrf.mxu3 }
  0xbd   : > { %2992 = vst [vmem:[#allocation13_spill] sm:$0xff] %v2442_v10  ;;  %v1005_v31 = vpop.f32.mrf.mxu0  ;;  %v1174_v32 = vpop.f32.mrf.mxu1 }
  0xbe   : > { %v1006_v39 = vadd.f32 %v1005_v31, %v2270_v0  ;;  %v1175_v40 = vadd.f32 %v1174_v32, %v2270_v0  ;;  %3002 = vst [vmem:[#allocation23_spill] sm:$0xff] %v2494_v12  ;;  %v2498_v20 = vpop.permute.xlu2 %634 }
  0xc0   : > { %1877 = vmatmul.msk.bf16.gmra.mxu0 %vm882_vm1, %v1945_v30  ;;  %1909 = vmatmul.msk.bf16.gmra.mxu1 %vm882_vm1, %v1945_v30  ;;  %v1332_v57 = vmax.f32 %v1006_v39, 0.0 }
  0xc1   : > { %1897 = vmatmul.msk.bf16.gmra.mxu2 %vm882_vm1, %v1965_v33  ;;  %1929 = vmatmul.msk.bf16.gmra.mxu3 %vm882_vm1, %v1965_v33  ;;  %v2465_v43 = vpop.permute.xlu1 %549  ;;  %v2467_v44 = vpop.permute.xlu0 %544 }
  0xc2   : > { %2995 = vst [vmem:[#allocation16_spill] sm:$0xff] %v2465_v43 }
  0xc3   : > { %2996 = vst [vmem:[#allocation17_spill] sm:$0xff] %v2467_v44 }
  0xc4   : > { %v2469_v0 = vpop.f32.mrf.mxu2  ;;  %v2471_v46 = vpop.f32.mrf.mxu3 }
  0xc5   : > { %2997 = vst [vmem:[#allocation18_spill] sm:$0xff] %v2469_v0  ;;  %v1007_v47 = vpop.f32.mrf.mxu0  ;;  %v1176_v48 = vpop.f32.mrf.mxu1 }
  0xc6   : > { %v1008_v54 = vadd.f32 %v1007_v47, %v2290_v7  ;;  %v1177_v55 = vadd.f32 %v1176_v48, %v2290_v7  ;;  %v1946_v7 = vld [vmem:[%s2948_s1 + $0x58] sm:$0xff]  ;;  %v2512_v47 = vpop.permute.xlu2 %719 }
  0xc7   : > { %3005 = vst [vmem:[#allocation26_spill] sm:$0xff] %v2512_v47 }
  0xc8   : > { %v1334_v58 = vmax.f32 %v1008_v54, 0.0 }
  0xc9   : > { %v2478_v63 = vpop.permute.xlu1 %524  ;;  %v2480_v5 = vpop.permute.xlu0 %539 }
  0xca   : > { %2999 = vst [vmem:[#allocation20_spill] sm:$0xff] %v2478_v63  ;;  %v2482_v6 = vpack.c.bf16 %v1334_v58, %v1332_v57  ;;  %v1333_v57 = vmax.f32 %v1175_v40, 0.0  ;;  %v1335_v58 = vmax.f32 %v1177_v55, 0.0 }
  0xcb   : > { %3000 = vst [vmem:[#allocation21_spill] sm:$0xff] %v2480_v5  ;;  %v1948_v5 = vld [vmem:[%s2948_s1 + $0x68] sm:$0xff] }
  0xcc   : > { %v2484_v8 = vpop.f32.mrf.mxu2  ;;  %v2486_v9 = vpop.f32.mrf.mxu3 }
  0xcd   : > { %3001 = vst [vmem:[#allocation22_spill] sm:$0xff] %v2484_v8  ;;  %v1010_v11 = vpop.f32.mrf.mxu0  ;;  %v1179_v15 = vpop.f32.mrf.mxu1 }
  0xce   : > { %v1011_v16 = vadd.f32 %v1010_v11, %v2320_v18  ;;  %v1180_v19 = vadd.f32 %v1179_v15, %v2320_v18  ;;  %v2529_v40 = vpop.permute.xlu2 %704 }
  0xcf   : > { %3008 = vst [vmem:[#allocation29_spill] sm:$0xff] %v2529_v40 }
  0xd0   : > { %1878 = vmatmul.msk.bf16.gmra.mxu0 %vm882_vm1, %v1946_v7  ;;  %1910 = vmatmul.msk.bf16.gmra.mxu1 %vm882_vm1, %v1946_v7  ;;  %v1336_v48 = vmax.f32 %v1011_v16, 0.0  ;;  %v2527_v16 = vpack.c.bf16 %v1335_v58, %v1333_v57  ;;  %v1337_v58 = vmax.f32 %v1180_v19, 0.0 }
  0xd1   : > { %1898 = vmatmul.msk.bf16.gmra.mxu2 %vm882_vm1, %v1966_v61  ;;  %1930 = vmatmul.msk.bf16.gmra.mxu3 %vm882_vm1, %v1966_v61  ;;  %v2504_v22 = vpop.permute.xlu1 %519  ;;  %v2506_v30 = vpop.permute.xlu0 %514  ;;  %v1947_v61 = vld [vmem:[%s2948_s1 + $0x60] sm:$0xff] }
  0xd2   : > { %3003 = vst [vmem:[#allocation24_spill] sm:$0xff] %v2504_v22 }
  0xd3   : > { %3004 = vst [vmem:[#allocation25_spill] sm:$0xff] %v2506_v30 }
  0xd4   : > { %v2508_v31 = vpop.f32.mrf.mxu2  ;;  %v1279_v32 = vpop.f32.mrf.mxu3  ;;  %3007 = vst [vmem:[#allocation28_spill] sm:$0xff] %v2527_v16 }
  0xd5   : > { %v1012_v33 = vpop.f32.mrf.mxu0  ;;  %v1181_v39 = vpop.f32.mrf.mxu1  ;;  %v1280_v57 = vadd.f32 %v1279_v32, %v2498_v20 }
  0xd6   : > { %v1013_v18 = vadd.f32 %v1012_v33, %v2318_v17  ;;  %v1182_v42 = vadd.f32 %v1181_v39, %v2318_v17  ;;  %v2543_v12 = vpop.permute.xlu2 %619 }
  0xd7   : > { %v1417_v47 = vmax.f32 %v1280_v57, 0.0 }
  0xd8   : > { %v1338_v54 = vmax.f32 %v1013_v18, 0.0  ;;  %v1339_v16 = vmax.f32 %v1182_v42, 0.0 }
  0xd9   : > { %v2514_v59 = vpop.permute.xlu1 %714  ;;  %v2516_v60 = vpop.permute.xlu0 %639 }
  0xda   : > { %3006 = vst [vmem:[#allocation27_spill] sm:$0xff] %v2514_v59  ;;  %v2518_v7 = vpack.c.bf16 %v1338_v54, %v1336_v48  ;;  %v2560_v42 = vpack.c.bf16 %v1339_v16, %v1337_v58 }
  0xdc   : > { %v2520_v11 = vpop.f32.mrf.mxu2  ;;  %v1281_v15 = vpop.f32.mrf.mxu3  ;;  %3014 = vst [vmem:[#allocation35_spill] sm:$0xff] %v2560_v42 }
  0xdd   : > { %v2525_v17 = vpop.f32.mrf.mxu0  ;;  %v1184_v33 = vpop.f32.mrf.mxu1  ;;  %v1282_v40 = vadd.f32 %v1281_v15, %v2516_v60 }
  0xde   : > { %v2562_v15 = vpop.permute.xlu2 %604 }
  0xdf   : > { %v1419_v63 = vmax.f32 %v1282_v40, 0.0 }
  0xe0   : > { %1879 = vmatmul.msk.bf16.gmra.mxu0 %vm882_vm1, %v1947_v61  ;;  %1911 = vmatmul.msk.bf16.gmra.mxu1 %vm882_vm1, %v1947_v61 }
  0xe1   : > { %v2533_v55 = vpop.permute.xlu1 %629  ;;  %v2535_v39 = vpop.permute.xlu0 %624  ;;  %v2558_v19 = vpack.c.bf16 %v1419_v63, %v1417_v47  ;;  %v1185_v47 = vadd.f32 %v1184_v33, %v2306_v14  ;;  %v1949_v33 = vld [vmem:[%s2948_s1 + $0x70] sm:$0xff] }
  0xe2   : > { %3009 = vst [vmem:[#allocation30_spill] sm:$0xff] %v2533_v55  ;;  %v2568_v40 = vadd.f32 %v2471_v46, %v2535_v39 }
  0xe3   : > { %3010 = vst [vmem:[#allocation31_spill] sm:$0xff] %v2535_v39 }
  0xe4   : > { %v2537_v18 = vpop.f32.mrf.mxu2  ;;  %v2539_v48 = vpop.f32.mrf.mxu3  ;;  %3013 = vst [vmem:[#allocation34_spill] sm:$0xff] %v2558_v19 }
  0xe5   : > { %v2541_v54 = vpop.f32.mrf.mxu0  ;;  %v1186_v34 = vpop.f32.mrf.mxu1 }
  0xe6   : > { %v1187_v16 = vadd.f32 %v1186_v34, %v2335_v24  ;;  %v2580_v42 = vpop.permute.xlu2 %689  ;;  %v2632_v39 = vadd.f32 %v2541_v54, %v2335_v24 }
  0xe8   : > { %v1343_v43 = vmax.f32 %v1187_v16, 0.0 }
  0xe9   : > { %v2547_v61 = vpop.permute.xlu1 %614  ;;  %v2549_v59 = vpop.permute.xlu0 %709 }
  0xea   : > { %3011 = vst [vmem:[#allocation32_spill] sm:$0xff] %v2547_v61  ;;  %v2595_v34 = vadd.f32 %v2420_v4, %v2547_v61 }
  0xeb   : > { %3012 = vst [vmem:[#allocation33_spill] sm:$0xff] %v2549_v59 }
  0xec   : > { %v2551_v56 = vpop.f32.mrf.mxu2  ;;  %v2553_v41 = vpop.f32.mrf.mxu3 }
  0xed   : > { %v1020_v44 = vpop.f32.mrf.mxu0  ;;  %v1189_v32 = vpop.f32.mrf.mxu1 }
  0xee   : > { %v2599_v16 = vpop.permute.xlu2 %674  ;;  %v1190_v4 = vadd.f32 %v1189_v32, %v2333_v23 }
  0xf0   : > { %1880 = vmatmul.msk.bf16.gmra.mxu0 %vm882_vm1, %v1948_v5  ;;  %1912 = vmatmul.msk.bf16.gmra.mxu1 %vm882_vm1, %v1948_v5  ;;  %v1341_v5 = vmax.f32 %v1185_v47, 0.0  ;;  %v1345_v10 = vmax.f32 %v1190_v4, 0.0 }
  0xf1   : > { %v2570_v57 = vpop.permute.xlu1 %699  ;;  %v2572_v59 = vpop.permute.xlu0 %694 }
  0xf2   : > { %3015 = vst [vmem:[#allocation36_spill] sm:$0xff] %v2570_v57  ;;  %v2597_v47 = vpack.c.bf16 %v1343_v43, %v1341_v5 }
  0xf3   : > { %3016 = vst [vmem:[#allocation37_spill] sm:$0xff] %v2572_v59 }
  0xf4   : > { %v2574_v13 = vpop.f32.mrf.mxu2  ;;  %v2576_v63 = vpop.f32.mrf.mxu3  ;;  %3017 = vst [vmem:[#allocation38_spill] sm:$0xff] %v2597_v47 }
  0xf5   : > { %v1022_v58 = vpop.f32.mrf.mxu0  ;;  %v1191_v19 = vpop.f32.mrf.mxu1 }
  0xf6   : > { %v1192_v51 = vadd.f32 %v1191_v19, %v2328_v21  ;;  %v2613_v47 = vpop.permute.xlu2 %589 }
  0xf7   : > { %3020 = vst [vmem:[#allocation41_spill] sm:$0xff] %v2613_v47 }
  0xf8   : > { %v1347_v3 = vmax.f32 %v1192_v51, 0.0  ;;  %v1023_v51 = vadd.f32 %v1022_v58, %v2328_v21 }
  0xf9   : > { %v2582_v46 = vpop.permute.xlu1 %684  ;;  %v2584_v25 = vpop.permute.xlu0 %609 }
  0xfa   : > { %v2620_v0 = vpack.c.bf16 %v1347_v3, %v1345_v10  ;;  %v1021_v3 = vadd.f32 %v1020_v44, %v2333_v23 }
  0xfc   : > { %v2586_v57 = vpop.f32.mrf.mxu2  ;;  %v2588_v59 = vpop.f32.mrf.mxu3  ;;  %3021 = vst [vmem:[#allocation42_spill] sm:$0xff] %v2620_v0  ;;  %v2638_v0 = vadd.f32 %v2486_v9, %v2533_v55  ;;  %v2650_v9 = vadd.f32 %v2525_v17, %v2306_v14 }
  0xfd   : > { %v1025_v22 = vpop.f32.mrf.mxu0  ;;  %v1194_v30 = vpop.f32.mrf.mxu1 }
  0xfe   : > { %v2624_v19 = vpop.permute.xlu2 %574  ;;  %v1026_v21 = vadd.f32 %v1025_v22, %v2362_v36  ;;  %v2642_v58 = vadd.f32 %v1194_v30, %v2362_v36 }
  0xff   : > { %3023 = vst [vmem:[#allocation44_spill] sm:$0xff] %v2624_v19 }
 0x100   : > { %1881 = vmatmul.msk.bf16.gmra.mxu0 %vm882_vm1, %v1949_v33  ;;  %1913 = vmatmul.msk.bf16.gmra.mxu1 %vm882_vm1, %v1949_v33 }
 0x101   : > { %v2603_v26 = vpop.permute.xlu0 %594  ;;  %v2605_v62 = vpop.permute.xlu1 %599 }
 0x102   : > { %3018 = vst [vmem:[#allocation39_spill] sm:$0xff] %v2603_v26 }
 0x103   : > { %3019 = vst [vmem:[#allocation40_spill] sm:$0xff] %v2605_v62  ;;  %v1950_v62 = vld [vmem:[%s2948_s1 + $0x78] sm:$0xff] }
 0x104   : > { %v2607_v52 = vpop.f32.mrf.mxu2  ;;  %v2609_v37 = vpop.f32.mrf.mxu3 }
 0x105   : > { %v1027_v43 = vpop.f32.mrf.mxu0  ;;  %v1196_v5 = vpop.f32.mrf.mxu1 }
 0x106   : > { %v1197_v23 = vadd.f32 %v1196_v5, %v2360_v35  ;;  %v660_v36 = vpop.permute.xlu2 %659  ;;  %v1413_v5 = vmax.f32 %v2568_v40, 0.0  ;;  %v1951_v40 = vld [vmem:[%s2948_s1 + $0x80] sm:$0xff] }
 0x108   : > { %v1351_v17 = vmax.f32 %v1197_v23, 0.0  ;;  %v1272_v23 = vadd.f32 %v2444_v29, %v2543_v12 }
 0x109   : > { %v2615_v61 = vpop.permute.xlu0 %679  ;;  %v2622_v32 = vpop.permute.xlu1 %584 }
 0x10a   : > { %3022 = vst [vmem:[#allocation43_spill] sm:$0xff] %v2622_v32 }
 0x10c   : > { %v1127_v33 = vpop.f32.mrf.mxu2  ;;  %v1296_v26 = vpop.f32.mrf.mxu3 }
 0x10d   : > { %v1030_v1 = vpop.f32.mrf.mxu0  ;;  %v1199_v27 = vpop.f32.mrf.mxu1 }
 0x10e   : > { %v1200_v47 = vadd.f32 %v1199_v27, %v2346_v28  ;;  %v1031_v10 = vadd.f32 %v1030_v1, %v2346_v28  ;;  %v1028_v27 = vadd.f32 %v1027_v43, %v2360_v35  ;;  %v1415_v43 = vmax.f32 %v2638_v0, 0.0  ;;  %v645_v29 = vpop.permute.xlu2 %644 }
 0x10f   : > { %v1348_v35 = vmax.f32 %v1026_v21, 0.0 }
 0x110   : > { %1882 = vmatmul.msk.bf16.gmra.mxu0 %vm882_vm1, %v1950_v62  ;;  %1914 = vmatmul.msk.bf16.gmra.mxu1 %vm882_vm1, %v1950_v62  ;;  %v1346_v62 = vmax.f32 %v1023_v51, 0.0  ;;  %v1353_v44 = vmax.f32 %v1200_v47, 0.0  ;;  %v1344_v51 = vmax.f32 %v1021_v3, 0.0  ;;  %v1352_v30 = vmax.f32 %v1031_v10, 0.0 }
 0x111   : > { %v665_v4 = vpop.permute.xlu0 %664  ;;  %v670_v2 = vpop.permute.xlu1 %669  ;;  %v1349_v47 = vmax.f32 %v2642_v58, 0.0  ;;  %v1350_v14 = vmax.f32 %v1028_v27, 0.0 }
 0x113   : > { %v1465_v27 = vpack.c.bf16 %v1350_v14, %v1348_v35 }
 0x114   : > { %v1130_v19 = vpop.f32.mrf.mxu2  ;;  %v1299_v32 = vpop.f32.mrf.mxu3 }
 0x115   : > { %v1032_v24 = vpop.f32.mrf.mxu0  ;;  %v1201_v54 = vpop.f32.mrf.mxu1  ;;  %v1131_v10 = vadd.f32 %v1130_v19, %v2599_v16  ;;  %v1300_v0 = vadd.f32 %v1299_v32, %v2599_v16  ;;  %v1295_v19 = vadd.f32 %v2609_v37, %v665_v4  ;;  %v1409_v37 = vmax.f32 %v2595_v34, 0.0 }
 0x116   : > { %v1033_v28 = vadd.f32 %v1032_v24, %v2381_v50  ;;  %v1202_v1 = vadd.f32 %v1201_v54, %v2381_v50  ;;  %v1463_v50 = vpack.c.bf16 %v1346_v62, %v1344_v51  ;;  %v1265_v62 = vadd.f32 %v2366_v38, %v2562_v15 }
 0x118   : > { %v1354_v8 = vmax.f32 %v1033_v28, 0.0  ;;  %v1355_v55 = vmax.f32 %v1202_v1, 0.0  ;;  %v1128_v28 = vadd.f32 %v1127_v33, %v670_v2  ;;  %v1297_v1 = vadd.f32 %v1296_v26, %v670_v2 }
 0x119   : > { %v2656_v24 = vpop.permute.xlu0 %579  ;;  %v1432_v2 = vmax.f32 %v1131_v10, 0.0  ;;  %v1433_v26 = vmax.f32 %v1300_v0, 0.0  ;;  %v2685_v10 = vpack.c.bf16 %v1351_v17, %v1349_v47  ;;  %v1340_v47 = vmax.f32 %v2650_v9, 0.0 }
 0x11a   : > { %v2658_v54 = vpack.c.bf16 %v1355_v55, %v1353_v44  ;;  %v1467_v3 = vpack.c.bf16 %v1354_v8, %v1352_v30  ;;  %v1267_v55 = vadd.f32 %v2387_v53, %v2584_v25  ;;  %v1126_v8 = vadd.f32 %v2607_v52, %v665_v4 }
 0x11b   : > { %v1430_v38 = vmax.f32 %v1128_v28, 0.0  ;;  %v1431_v44 = vmax.f32 %v1297_v1, 0.0  ;;  %v1429_v52 = vmax.f32 %v1295_v19, 0.0  ;;  %v1411_v28 = vmax.f32 %v1272_v23, 0.0  ;;  %v655_v1 = vpop.permute.xlu1 %654 }
 0x11c   : > { %1533 = vmatpush.bf16.msrb.mxu2 %v1467_v3  ;;  %v1132_v21 = vpop.f32.mrf.mxu2  ;;  %v1301_v22 = vpop.f32.mrf.mxu3  ;;  %v1428_v30 = vmax.f32 %v1126_v8, 0.0  ;;  %v1405_v3 = vmax.f32 %v1265_v62, 0.0  ;;  %v1121_v62 = vadd.f32 %v2574_v13, %v655_v1  ;;  %v1123_v8 = vadd.f32 %v2586_v57, %v660_v36 }
 0x11d   : > { %v1035_v16 = vpop.f32.mrf.mxu0  ;;  %v1204_v33 = vpop.f32.mrf.mxu1  ;;  %v1133_v32 = vadd.f32 %v1132_v21, %v2615_v61  ;;  %v1302_v58 = vadd.f32 %v1301_v22, %v2615_v61  ;;  %v1407_v61 = vmax.f32 %v1267_v55, 0.0  ;;  %v2690_v21 = vpack.c.bf16 %v1431_v44, %v1429_v52 }
 0x11e   : > { %v1205_v4 = vadd.f32 %v1204_v33, %v2379_v49  ;;  %v2683_v14 = vpack.c.bf16 %v1430_v38, %v1428_v30  ;;  %v1036_v34 = vadd.f32 %v1035_v16, %v2379_v49  ;;  %v1290_v55 = vadd.f32 %v2576_v63, %v655_v1 }
 0x11f   : > { %v1434_v51 = vmax.f32 %v1133_v32, 0.0  ;;  %v1435_v53 = vmax.f32 %v1302_v58, 0.0  ;;  %v1292_v19 = vadd.f32 %v2588_v59, %v660_v36  ;;  %v1116_v49 = vadd.f32 %v2537_v18, %v645_v29 }
 0x120   : > { %1883 = vmatmul.msk.bf16.gmra.mxu0 %vm882_vm1, %v1951_v40  ;;  %1915 = vmatmul.msk.bf16.gmra.mxu1 %vm882_vm1, %v1951_v40  ;;  %v2692_v40 = vpack.c.bf16 %v1415_v43, %v1413_v5  ;;  %v1357_v17 = vmax.f32 %v1205_v4, 0.0  ;;  %v2700_v16 = vpack.c.bf16 %v1407_v61, %v1405_v3  ;;  %v1424_v13 = vmax.f32 %v1121_v62, 0.0  ;;  %v1952_v4 = vld [vmem:[%s2948_s1 + $0x88] sm:$0xff] }
 0x121   : > { %1534 = vmatpush.bf16.msrb.mxu2 %v1465_v27  ;;  %v2679_v22 = vpop.permute.xlu0 %564  ;;  %v2681_v35 = vpack.c.bf16 %v1434_v51, %v1432_v2  ;;  %v2687_v0 = vpack.c.bf16 %v1435_v53, %v1433_v26  ;;  %v1425_v26 = vmax.f32 %v1290_v55, 0.0  ;;  %v1285_v63 = vadd.f32 %v2539_v48, %v645_v29 }
 0x122   : > { %3024 = vst [vmem:[#allocation45_spill] sm:$0xff] %v2692_v40  ;;  %v1426_v9 = vmax.f32 %v1123_v8, 0.0  ;;  %v1427_v36 = vmax.f32 %v1292_v19, 0.0  ;;  %v1356_v32 = vmax.f32 %v1036_v34, 0.0  ;;  %v3026_v18 = vmax.f32 %v2632_v39, 0.0 }
 0x123   : > { %3025 = vst [vmem:[#allocation46_spill] sm:$0xff] %v2700_v16  ;;  %v2708_v27 = vpack.c.bf16 %v1411_v28, %v1409_v37  ;;  %v1420_v48 = vmax.f32 %v1116_v49, 0.0  ;;  %v1421_v51 = vmax.f32 %v1285_v63, 0.0  ;;  %v3034_v49 = vld [vmem:[#allocation18_spill] sm:$0xff] }
 0x124   : > { %v1304_v33 = vpop.f32.mrf.mxu3  ;;  %v1461_v58 = vpack.c.bf16 %v3026_v18, %v1340_v47  ;;  %v2710_v38 = vpack.c.bf16 %v1426_v9, %v1424_v13  ;;  %v2712_v44 = vpack.c.bf16 %v1427_v36, %v1425_v26  ;;  %v3037_v18 = vld [vmem:[#allocation32_spill] sm:$0xff] }
 0x125   : > { %1535 = vmatpush.bf16.msrb.mxu2 %v1463_v50  ;;  %v1037_v2 = vpop.f32.mrf.mxu0  ;;  %v1206_v43 = vpop.f32.mrf.mxu1  ;;  %v1305_v5 = vadd.f32 %v1304_v33, %v2582_v46  ;;  %3027 = vst [vmem:[#allocation47_spill] sm:$0xff] %v2708_v27  ;;  %v3032_v33 = vld [vmem:[#allocation22_spill] sm:$0xff] }
 0x126   : > { %v1038_v57 = vadd.f32 %v1037_v2, %v2374_v45  ;;  %v1207_v59 = vadd.f32 %v1206_v43, %v2374_v45  ;;  %3028 = vst [vmem:[#allocation48_spill] sm:$0xff] %v2712_v44 }
 0x127   : > { %v1437_v29 = vmax.f32 %v1305_v5, 0.0  ;;  %v3035_v5 = vld [vmem:[#allocation12_spill] sm:$0xff] }
 0x128   : > { %v1358_v50 = vmax.f32 %v1038_v57, 0.0  ;;  %v1359_v23 = vmax.f32 %v1207_v59, 0.0  ;;  %v3036_v57 = vld [vmem:[#allocation6_spill] sm:$0xff] }
 0x129   : > { %1536 = vmatpush.bf16.msrb.mxu2 %v1461_v58  ;;  %v650_v53 = vpop.permute.xlu0 %649  ;;  %v3038_v58 = vld [vmem:[#allocation8_spill] sm:$0xff] }
 0x12a   : > { %v2714_v30 = vpack.c.bf16 %v1359_v23, %v1357_v17  ;;  %v1118_v45 = vadd.f32 %v2551_v56, %v650_v53  ;;  %v1287_v52 = vadd.f32 %v2553_v41, %v650_v53  ;;  %v2718_v39 = vpack.c.bf16 %v1358_v50, %v1356_v32  ;;  %v3030_v17 = vld [vmem:[#allocation7_spill] sm:$0xff]  ;;  %v3039_v23 = vld [vmem:[#allocation13_spill] sm:$0xff] }
 0x12b   : > { %v1111_v56 = vadd.f32 %v2508_v31, %v2498_v20  ;;  %v1113_v41 = vadd.f32 %v2520_v11, %v2516_v60  ;;  %v3031_v31 = vld [vmem:[#allocation30_spill] sm:$0xff]  ;;  %v3033_v11 = vld [vmem:[#allocation31_spill] sm:$0xff]  ;;  %v1101_v50 = vadd.f32 %v3038_v58, %v3037_v18 }
 0x12c   : > { %v1306_v37 = vpop.f32.mrf.mxu3  ;;  %v1422_v3 = vmax.f32 %v1118_v45, 0.0  ;;  %v1423_v61 = vmax.f32 %v1287_v52, 0.0  ;;  %v1108_v60 = vadd.f32 %v3032_v33, %v3031_v31  ;;  %v1106_v2 = vadd.f32 %v3034_v49, %v3033_v11  ;;  %v3040_v52 = vld [vmem:[#allocation3_spill] sm:$0xff] }
 0x12d   : > { %1537 = vmatpush.bf16.msrb.mxu2 %v2518_v7  ;;  %v1040_v34 = vpop.f32.mrf.mxu0  ;;  %v1209_v28 = vpop.f32.mrf.mxu1  ;;  %v1307_v1 = vadd.f32 %v1306_v37, %v2580_v42  ;;  %v1416_v19 = vmax.f32 %v1111_v56, 0.0  ;;  %v1418_v47 = vmax.f32 %v1113_v41, 0.0  ;;  %v2752_v37 = vld [vmem:[#allocation1] sm:$0xff]  ;;  %v1953_v56 = vld [vmem:[%s2948_s1 + $0x90] sm:$0xff] }
 0x12e   : > { %v2729_v62 = vpack.c.bf16 %v1422_v3, %v1420_v48  ;;  %v2731_v55 = vpack.c.bf16 %v1423_v61, %v1421_v51  ;;  %v1210_v20 = vadd.f32 %v1209_v28, %v3030_v17  ;;  %v1041_v43 = vadd.f32 %v1040_v34, %v3030_v17  ;;  %v3041_v61 = vld [vmem:[#allocation2_spill] sm:$0xff]  ;;  %v3044_v49 = vld [vmem:[#allocation11_spill] sm:$0xff] }
 0x12f   : > { %v1439_v8 = vmax.f32 %v1307_v1, 0.0  ;;  %v1499_v63 = vpack.c.bf16 %v1418_v47, %v1416_v19  ;;  %v1414_v36 = vmax.f32 %v1108_v60, 0.0  ;;  %v1412_v32 = vmax.f32 %v1106_v2, 0.0  ;;  %v3042_v1 = vld [vmem:[#allocation4_spill] sm:$0xff] }
 0x130   : > { %3029 = vst [vmem:[#allocation49_spill] sm:$0xff] %v2731_v55  ;;  %1884 = vmatmul.msk.bf16.gmra.mxu0 %vm882_vm1, %v1952_v4  ;;  %1916 = vmatmul.msk.bf16.gmra.mxu1 %vm882_vm1, %v1952_v4  ;;  %v1103_v48 = vadd.f32 %v3039_v23, %v2543_v12  ;;  %v1360_v51 = vmax.f32 %v1041_v43, 0.0  ;;  %v1408_v34 = vmax.f32 %v1101_v50, 0.0  ;;  %v1098_v12 = vadd.f32 %v3042_v1, %v2584_v25  ;;  %v3054_v55 = vld [vmem:[#allocation20_spill] sm:$0xff] }
 0x131   : > { %1538 = vmatpush.bf16.msrb.mxu2 %v2482_v6  ;;  %v2736_v7 = vpack.c.bf16 %v1439_v8, %v1437_v29  ;;  %v1361_v6 = vmax.f32 %v1210_v20, 0.0  ;;  %v1096_v29 = vadd.f32 %v3041_v61, %v2562_v15  ;;  %v1497_v41 = vpack.c.bf16 %v1414_v36, %v1412_v32  ;;  %v3043_v20 = vld [vmem:[#allocation5_spill] sm:$0xff] }
 0x132   : > { %v1410_v28 = vmax.f32 %v1103_v48, 0.0  ;;  %v1406_v17 = vmax.f32 %v1098_v12, 0.0  ;;  %v3045_v32 = vld [vmem:[#allocation25_spill] sm:$0xff]  ;;  %v3046_v48 = vld [vmem:[#allocation24_spill] sm:$0xff] }
 0x133   : > { %v1404_v47 = vmax.f32 %v1096_v29, 0.0 }
 0x134   : > { %v1495_v15 = vpack.c.bf16 %v1410_v28, %v1408_v34 }
 0x135   : > { %1539 = vmatpush.bf16.msrb.mxu2 %v3035_v5  ;;  %v1042_v13 = vpop.f32.mrf.mxu0  ;;  %v1211_v26 = vpop.f32.mrf.mxu1  ;;  %v1493_v33 = vpack.c.bf16 %v1406_v17, %v1404_v47 }
 0x136   : > { %v1043_v59 = vadd.f32 %v1042_v13, %v3036_v57  ;;  %v1212_v9 = vadd.f32 %v1211_v26, %v3036_v57 }
 0x138   : > { %v1362_v53 = vmax.f32 %v1043_v59, 0.0  ;;  %v1363_v45 = vmax.f32 %v1212_v9, 0.0  ;;  %v1954_v59 = vld [vmem:[%s2948_s1 + $0x98] sm:$0xff] }
 0x139   : > { %1540 = vmatpush.bf16.msrb.mxu2 %v3040_v52 }
 0x13a   : > { %v2754_v4 = vpack.c.bf16 %v1363_v45, %v1361_v6  ;;  %v2756_v3 = vpack.c.bf16 %v1362_v53, %v1360_v51 }
 0x13c   : > { %1541 = vmatmul.bf16.vlgmr.msrb.gmra.mxu2 %v2752_v37 }
 0x13d   : > { %1559 = vmatpush.bf16.msra.mxu2 %v1499_v63  ;;  %v1045_v8 = vpop.f32.mrf.mxu0  ;;  %v1214_v19 = vpop.f32.mrf.mxu1 }
 0x13e   : > { %v1046_v25 = vadd.f32 %v1045_v8, %v3043_v20  ;;  %v1215_v31 = vadd.f32 %v1214_v19, %v3043_v20 }
 0x140   : > { %1885 = vmatmul.msk.bf16.gmra.mxu0 %vm882_vm1, %v1953_v56  ;;  %1917 = vmatmul.msk.bf16.gmra.mxu1 %vm882_vm1, %v1953_v56  ;;  %v1364_v5 = vmax.f32 %v1046_v25, 0.0  ;;  %v1365_v13 = vmax.f32 %v1215_v31, 0.0  ;;  %v2787_v56 = vpop.f32.mrf.mxu2 }
 0x141   : > { %1560 = vmatpush.bf16.msra.mxu2 %v1497_v41 }
 0x145   : > { %1561 = vmatpush.bf16.msra.mxu2 %v1495_v15  ;;  %v1047_v60 = vpop.f32.mrf.mxu0  ;;  %v1216_v11 = vpop.f32.mrf.mxu1 }
 0x146   : > { %v1048_v2 = vadd.f32 %v1047_v60, %v3044_v49  ;;  %v1217_v43 = vadd.f32 %v1216_v11, %v3044_v49 }
 0x148   : > { %v1366_v26 = vmax.f32 %v1048_v2, 0.0  ;;  %v1367_v63 = vmax.f32 %v1217_v43, 0.0  ;;  %v2789_v8 = vpop.f32.mrf.mxu2  ;;  %v3047_v2 = vld [vmem:[#allocation10_spill] sm:$0xff] }
 0x149   : > { %1562 = vmatpush.bf16.msra.mxu2 %v1493_v33 }
 0x14a   : > { %v2772_v6 = vpack.c.bf16 %v1367_v63, %v1365_v13  ;;  %v2774_v57 = vpack.c.bf16 %v1366_v26, %v1364_v5  ;;  %v3048_v13 = vld [vmem:[#allocation16_spill] sm:$0xff]  ;;  %v3049_v63 = vld [vmem:[#allocation9_spill] sm:$0xff] }
 0x14d   : > { %v1050_v9 = vpop.f32.mrf.mxu0  ;;  %v1219_v36 = vpop.f32.mrf.mxu1 }
 0x14e   : > { %v1051_v18 = vadd.f32 %v1050_v9, %v3045_v32  ;;  %v1220_v58 = vadd.f32 %v1219_v36, %v3045_v32  ;;  %v3050_v36 = vld [vmem:[#allocation17_spill] sm:$0xff] }
 0x150   : > { %1886 = vmatmul.msk.bf16.gmra.mxu0 %vm882_vm1, %v1954_v59  ;;  %1918 = vmatmul.msk.bf16.gmra.mxu1 %vm882_vm1, %v1954_v59  ;;  %v1368_v45 = vmax.f32 %v1051_v18, 0.0  ;;  %v1369_v52 = vmax.f32 %v1220_v58, 0.0  ;;  %v1140_v17 = vpop.f32.mrf.mxu2 }
 0x155   : > { %v1052_v50 = vpop.f32.mrf.mxu0  ;;  %v1221_v23 = vpop.f32.mrf.mxu1 }
 0x156   : > { %v1053_v51 = vadd.f32 %v1052_v50, %v3046_v48  ;;  %v1222_v53 = vadd.f32 %v1221_v23, %v3046_v48  ;;  %v3051_v50 = vld [vmem:[#allocation21_spill] sm:$0xff] }
 0x158   : > { %v1370_v61 = vmax.f32 %v1053_v51, 0.0  ;;  %v1371_v29 = vmax.f32 %v1222_v53, 0.0  ;;  %v1142_v25 = vpop.f32.mrf.mxu2 }
 0x15a   : > { %v2785_v34 = vpack.c.bf16 %v1371_v29, %v1369_v52  ;;  %v1475_v28 = vpack.c.bf16 %v1370_v61, %v1368_v45  ;;  %v3052_v45 = vld [vmem:[#allocation15_spill] sm:$0xff] }
 0x15d   : > { %v1055_v1 = vpop.f32.mrf.mxu0  ;;  %v2791_v19 = vpop.f32.mrf.mxu1 }
 0x160   : > { %v1145_v11 = vpop.f32.mrf.mxu2 }
 0x165   : > { %v1057_v12 = vpop.f32.mrf.mxu0  ;;  %v2793_v15 = vpop.f32.mrf.mxu1 }
 0x168   : > { %v1147_v9 = vpop.f32.mrf.mxu2 }
 0x16d   : > { %v1060_v41 = vpop.f32.mrf.mxu0  ;;  %v2795_v33 = vpop.f32.mrf.mxu1 }
 0x16e   : > { %v1061_v52 = vadd.f32 %v1060_v41, %v3052_v45 }
 0x175   : > { %v1062_v47 = vpop.f32.mrf.mxu0  ;;  %v2797_v49 = vpop.f32.mrf.mxu1 }
 0x176   : > { %v1063_v23 = vadd.f32 %v1062_v47, %v3051_v50 }
 0x17d   : > { %v1065_v20 = vpop.f32.mrf.mxu0  ;;  %v2804_v53 = vpop.f32.mrf.mxu1 }
 0x17e   : > { %v1066_v32 = vadd.f32 %v1065_v20, %v3050_v36  ;;  %v1056_v20 = vadd.f32 %v1055_v1, %v3054_v55 }
 0x180   : > { %v1380_v61 = vmax.f32 %v1066_v32, 0.0 }
 0x185   : > { %v1067_v31 = vpop.f32.mrf.mxu0 }
 0x186   : > { %v1068_v26 = vadd.f32 %v1067_v31, %v3048_v13  ;;  %v3053_v31 = vld [vmem:[#allocation19_spill] sm:$0xff] }
 0x188   : > { %v1382_v48 = vmax.f32 %v1068_v26, 0.0 }
 0x18a   : > { %v1481_v16 = vpack.c.bf16 %v1382_v48, %v1380_v61 }
 0x18d   : > { %v1070_v60 = vpop.f32.mrf.mxu0 }
 0x18e   : > { %v1071_v43 = vadd.f32 %v1070_v60, %v3047_v2  ;;  %v1058_v60 = vadd.f32 %v1057_v12, %v3053_v31  ;;  %v3055_v12 = vld [vmem:[#allocation26_spill] sm:$0xff] }
 0x190   : > { %v1384_v18 = vmax.f32 %v1071_v43, 0.0  ;;  %v1376_v43 = vmax.f32 %v1061_v52, 0.0  ;;  %v1374_v47 = vmax.f32 %v1058_v60, 0.0  ;;  %v3057_v52 = vld [vmem:[#allocation33_spill] sm:$0xff] }
 0x191   : > { %v1148_v61 = vadd.f32 %v1147_v9, %v3057_v52 }
 0x195   : > { %v1072_v5 = vpop.f32.mrf.mxu0 }
 0x196   : > { %v1073_v59 = vadd.f32 %v1072_v5, %v3049_v63  ;;  %v1378_v5 = vmax.f32 %v1063_v23, 0.0 }
 0x198   : > { %v1386_v58 = vmax.f32 %v1073_v59, 0.0  ;;  %v1150_v59 = vpop.f32.mrf.mxu2  ;;  %v1479_v26 = vpack.c.bf16 %v1378_v5, %v1376_v43  ;;  %v2819_v5 = vpop.f32.mrf.mxu3 }
 0x19a   : > { %v1483_v51 = vpack.c.bf16 %v1386_v58, %v1384_v18  ;;  %v1372_v18 = vmax.f32 %v1056_v20, 0.0  ;;  %v1236_v58 = vpop.f32.mrf.mxu1  ;;  %v3058_v20 = vld [vmem:[#allocation29_spill] sm:$0xff] }
 0x19b   : > { %v1146_v43 = vadd.f32 %v1145_v11, %v3058_v20  ;;  %v1138_v11 = vadd.f32 %v2789_v8, %v2580_v42 }
 0x19c   : > { %1546 = vmatpush.bf16.msrb.mxu3 %v1483_v51  ;;  %v1477_v41 = vpack.c.bf16 %v1374_v47, %v1372_v18 }
 0x19d   : > { %v2807_v29 = vpop.f32.mrf.mxu0 }
 0x1a0   : > { %1547 = vmatpush.bf16.msrb.mxu3 %v1481_v16  ;;  %v1152_v32 = vpop.f32.mrf.mxu2  ;;  %v3056_v16 = vld [vmem:[#allocation27_spill] sm:$0xff] }
 0x1a1   : > { %v1153_v23 = vadd.f32 %v1152_v32, %v3055_v12  ;;  %v1151_v1 = vadd.f32 %v1150_v59, %v3056_v16  ;;  %v3060_v59 = vld [vmem:[#allocation37_spill] sm:$0xff] }
 0x1a2   : > { %v1239_v48 = vpop.f32.mrf.mxu1  ;;  %v1141_v9 = vadd.f32 %v1140_v17, %v3060_v59  ;;  %v1438_v17 = vmax.f32 %v1138_v11, 0.0 }
 0x1a3   : > { %v1450_v60 = vmax.f32 %v1153_v23, 0.0  ;;  %v1448_v47 = vmax.f32 %v1151_v1, 0.0  ;;  %v1444_v23 = vmax.f32 %v1146_v43, 0.0 }
 0x1a4   : > { %1548 = vmatpush.bf16.msrb.mxu3 %v1479_v26  ;;  %v3059_v26 = vld [vmem:[#allocation36_spill] sm:$0xff] }
 0x1a5   : > { %v2811_v27 = vpop.f32.mrf.mxu0  ;;  %v1143_v18 = vadd.f32 %v1142_v25, %v3059_v26  ;;  %v1515_v32 = vpack.c.bf16 %v1450_v60, %v1448_v47  ;;  %v1440_v25 = vmax.f32 %v1141_v9, 0.0  ;;  %v1240_v9 = vadd.f32 %v1239_v48, %v3047_v2  ;;  %v2857_v2 = vld [vmem:[#allocation1 + $0x1b] sm:$0xff] }
 0x1a7   : > { %v1442_v1 = vmax.f32 %v1143_v18, 0.0 }
 0x1a8   : > { %1549 = vmatpush.bf16.msrb.mxu3 %v1477_v41  ;;  %v1446_v41 = vmax.f32 %v1148_v61, 0.0 }
 0x1a9   : > { %v1511_v43 = vpack.c.bf16 %v1442_v1, %v1440_v25  ;;  %v1235_v1 = vadd.f32 %v2804_v53, %v3050_v36  ;;  %v1385_v25 = vmax.f32 %v1240_v9, 0.0  ;;  %v3063_v36 = vld [vmem:[#allocation40_spill] sm:$0xff] }
 0x1aa   : > { %v1241_v44 = vpop.f32.mrf.mxu1  ;;  %v1513_v40 = vpack.c.bf16 %v1446_v41, %v1444_v23  ;;  %v1237_v23 = vadd.f32 %v1236_v58, %v3048_v13  ;;  %v3062_v58 = vld [vmem:[#allocation41_spill] sm:$0xff] }
 0x1ab   : > { %v1381_v13 = vmax.f32 %v1235_v1, 0.0  ;;  %v3065_v1 = vld [vmem:[#allocation44_spill] sm:$0xff] }
 0x1ac   : > { %1550 = vmatpush.bf16.msrb.mxu3 %v1475_v28 }
 0x1ad   : > { %v2813_v51 = vpop.f32.mrf.mxu0 }
 0x1b0   : > { %1551 = vmatpush.bf16.msrb.mxu3 %v2774_v57  ;;  %v2827_v57 = vld [vmem:[#allocation1 + $0x9] sm:$0xff] }
 0x1b4   : > { %1552 = vmatpush.bf16.msrb.mxu3 %v2756_v3  ;;  %v1136_v3 = vadd.f32 %v2787_v56, %v2582_v46 }
 0x1b5   : > { %v2823_v28 = vpop.f32.mrf.mxu0 }
 0x1b6   : > { %v1436_v60 = vmax.f32 %v1136_v3, 0.0 }
 0x1b8   : > { %1553 = vmatpush.bf16.msrb.mxu3 %v2718_v39  ;;  %v2835_v39 = vpop.f32.mrf.mxu3  ;;  %v1509_v46 = vpack.c.bf16 %v1438_v17, %v1436_v60  ;;  %v3061_v60 = vld [vmem:[#allocation39_spill] sm:$0xff] }
 0x1bb   : > { %1554 = vmatmul.bf16.vlgmr.msrb.gmra.mxu3 %v2827_v57 }
 0x1bc   : > { %1572 = vmatpush.bf16.msra.mxu3 %v1515_v32  ;;  %v2839_v32 = vpop.f32.mrf.mxu1 }
 0x1bd   : > { %v1085_v61 = vpop.f32.mrf.mxu0 }
 0x1bf   : > { %v2837_v47 = vpop.f32.mrf.mxu2 }
 0x1c0   : > { %1573 = vmatpush.bf16.msra.mxu3 %v1513_v40  ;;  %v2841_v8 = vpop.f32.mrf.mxu3  ;;  %v1242_v40 = vadd.f32 %v1241_v44, %v3049_v63  ;;  %v1383_v44 = vmax.f32 %v1237_v23, 0.0 }
 0x1c2   : > { %v1387_v3 = vmax.f32 %v1242_v40, 0.0 }
 0x1c4   : > { %1574 = vmatpush.bf16.msra.mxu3 %v1511_v43  ;;  %v2845_v18 = vpop.f32.mrf.mxu1  ;;  %v1484_v63 = vpack.c.bf16 %v1387_v3, %v1385_v25 }
 0x1c5   : > { %v1087_v56 = vpop.f32.mrf.mxu0 }
 0x1c6   : > { %v1088_v48 = vadd.f32 %v1087_v56, %v3062_v58  ;;  %v1083_v56 = vadd.f32 %v2823_v28, %v2656_v24 }
 0x1c7   : > { %v1544_v42 = vpop.f32.mrf.mxu2 }
 0x1c8   : > { %1575 = vmatpush.bf16.msra.mxu3 %v1509_v46  ;;  %v1316_v11 = vpop.f32.mrf.mxu3  ;;  %v1482_v46 = vpack.c.bf16 %v1383_v44, %v1381_v13  ;;  %v3064_v42 = vld [vmem:[#allocation43_spill] sm:$0xff]  ;;  %v1398_v9 = vmax.f32 %v1088_v48, 0.0 }
 0x1cc   : > { %1576 = vmatpush.bf16.msra.mxu3 %v2681_v35  ;;  %v1232_v35 = vadd.f32 %v2797_v49, %v3051_v50  ;;  %v1227_v49 = vadd.f32 %v2793_v15, %v3053_v31  ;;  %v2865_v43 = vpop.f32.mrf.mxu1 }
 0x1cd   : > { %v1090_v41 = vpop.f32.mrf.mxu0 }
 0x1ce   : > { %v1091_v17 = vadd.f32 %v1090_v41, %v3061_v60  ;;  %v1379_v50 = vmax.f32 %v1232_v35, 0.0  ;;  %v1375_v31 = vmax.f32 %v1227_v49, 0.0  ;;  %v2875_v35 = vpop.permute.xlu1 %569 }
 0x1d0   : > { %1577 = vmatpush.bf16.msra.mxu3 %v2683_v14  ;;  %v1400_v40 = vmax.f32 %v1091_v17, 0.0  ;;  %v1319_v15 = vpop.f32.mrf.mxu3  ;;  %v1076_v17 = vadd.f32 %v2807_v29, %v2679_v22 }
 0x1d1   : > { %v1320_v29 = vadd.f32 %v1319_v15, %v3056_v16  ;;  %v3066_v16 = vld [vmem:[#allocation42_spill] sm:$0xff] }
 0x1d2   : > { %v1388_v48 = vmax.f32 %v1076_v17, 0.0 }
 0x1d4   : > { %1578 = vmatpush.bf16.msra.mxu3 %v2710_v38  ;;  %v1230_v38 = vadd.f32 %v2795_v33, %v3052_v45  ;;  %v1225_v33 = vadd.f32 %v2791_v19, %v3054_v55  ;;  %v1078_v55 = vadd.f32 %v2811_v27, %v2875_v35  ;;  %v1394_v19 = vmax.f32 %v1083_v56, 0.0  ;;  %v2884_v27 = vld [vmem:[#allocation1 + $0x12] sm:$0xff]  ;;  %v3072_v56 = vld [vmem:[#allocation34_spill] sm:$0xff] }
 0x1d5   : > { %v1092_v14 = vpop.f32.mrf.mxu0 }
 0x1d6   : > { %v1093_v53 = vadd.f32 %v1092_v14, %v3063_v36  ;;  %v1377_v45 = vmax.f32 %v1230_v38, 0.0  ;;  %v1373_v44 = vmax.f32 %v1225_v33, 0.0  ;;  %v2881_v38 = vpop.f32.mrf.mxu1 }
 0x1d8   : > { %1579 = vmatpush.bf16.msra.mxu3 %v2729_v62  ;;  %v1086_v62 = vadd.f32 %v1085_v61, %v3064_v42  ;;  %v1402_v41 = vmax.f32 %v1093_v53, 0.0  ;;  %v1480_v3 = vpack.c.bf16 %v1379_v50, %v1377_v45  ;;  %v1081_v61 = vadd.f32 %v2813_v51, %v3065_v1  ;;  %v1321_v53 = vpop.f32.mrf.mxu3  ;;  %v3067_v45 = vld [vmem:[#allocation38_spill] sm:$0xff] }
 0x1d9   : > { %v1478_v28 = vpack.c.bf16 %v1375_v31, %v1373_v44  ;;  %v1390_v51 = vmax.f32 %v1078_v55, 0.0  ;;  %v1322_v50 = vadd.f32 %v1321_v53, %v3055_v12  ;;  %v1449_v12 = vmax.f32 %v1320_v29, 0.0  ;;  %v3075_v31 = vld [vmem:[#allocation47_spill] sm:$0xff] }
 0x1da   : > { %v1491_v23 = vpack.c.bf16 %v1402_v41, %v1400_v40  ;;  %v1396_v25 = vmax.f32 %v1086_v62, 0.0  ;;  %v1392_v14 = vmax.f32 %v1081_v61, 0.0  ;;  %v1317_v62 = vadd.f32 %v1316_v11, %v3057_v52 }
 0x1db   : > { %1580 = vmatmul.bf16.vlgmr.msra.gmra.mxu3 %v2857_v2  ;;  %v1485_v49 = vpack.c.bf16 %v1390_v51, %v1388_v48  ;;  %v1451_v40 = vmax.f32 %v1322_v50, 0.0  ;;  %v1310_v52 = vadd.f32 %v2819_v5, %v3060_v59  ;;  %v3070_v5 = vld [vmem:[#allocation23_spill] sm:$0xff]  ;;  %v3071_v59 = vld [vmem:[#allocation14_spill] sm:$0xff]  ;;  %v1252_v44 = vadd.f32 %v2881_v38, %v2656_v24 }
 0x1dc   : > { %1598 = vmatpush.bf16.msrb.mxu3 %v1484_v63  ;;  %1563 = vmatpush.bf16.msra.mxu2 %v1491_v23  ;;  %v1489_v63 = vpack.c.bf16 %v1398_v9, %v1396_v25  ;;  %v1487_v13 = vpack.c.bf16 %v1394_v19, %v1392_v14  ;;  %v3073_v9 = vld [vmem:[#allocation45_spill] sm:$0xff]  ;;  %v3074_v23 = vld [vmem:[#allocation48_spill] sm:$0xff] }
 0x1dd   : > { %v1516_v41 = vpack.c.bf16 %v1451_v40, %v1449_v12 }
 0x1e0   : > { %1599 = vmatpush.bf16.msrb.mxu3 %v1482_v46  ;;  %1564 = vmatpush.bf16.msra.mxu2 %v1489_v63  ;;  %v1254_v46 = vpop.f32.mrf.mxu1  ;;  %v1395_v63 = vmax.f32 %v1252_v44, 0.0 }
 0x1e4   : > { %1600 = vmatpush.bf16.msrb.mxu3 %v1480_v3  ;;  %1565 = vmatpush.bf16.msra.mxu2 %v1487_v13 }
 0x1e8   : > { %1601 = vmatpush.bf16.msrb.mxu3 %v1478_v28  ;;  %1566 = vmatpush.bf16.msra.mxu2 %v1485_v49  ;;  %v1256_v33 = vpop.f32.mrf.mxu1  ;;  %v1245_v28 = vadd.f32 %v2839_v32, %v2679_v22 }
 0x1e9   : > { %v1257_v3 = vadd.f32 %v1256_v33, %v3062_v58  ;;  %v1247_v58 = vadd.f32 %v2845_v18, %v2875_v35 }
 0x1ea   : > { %v1389_v24 = vmax.f32 %v1245_v28, 0.0 }
 0x1eb   : > { %1567 = vmatmul.bf16.vlgmr.msra.gmra.mxu2 %v2884_v27 }
 0x1ec   : > { %1602 = vmatpush.bf16.msrb.mxu3 %v2785_v34  ;;  %1585 = vmatpush.bf16.msrb.mxu2 %v2658_v54  ;;  %v1315_v34 = vadd.f32 %v2841_v8, %v3058_v20  ;;  %v1312_v54 = vadd.f32 %v2835_v39, %v3059_v26  ;;  %v1441_v20 = vmax.f32 %v1310_v52, 0.0  ;;  %v3068_v39 = vld [vmem:[#allocation35_spill] sm:$0xff]  ;;  %v3069_v8 = vld [vmem:[#allocation28_spill] sm:$0xff] }
 0x1ee   : > { %v1445_v11 = vmax.f32 %v1315_v34, 0.0 }
 0x1f0   : > { %1603 = vmatpush.bf16.msrb.mxu3 %v2772_v6  ;;  %1586 = vmatpush.bf16.msrb.mxu2 %v2685_v10  ;;  %v1447_v6 = vmax.f32 %v1317_v62, 0.0  ;;  %v1443_v10 = vmax.f32 %v1312_v54, 0.0 }
 0x1f2   : > { %v1512_v26 = vpack.c.bf16 %v1443_v10, %v1441_v20 }
 0x1f4   : > { %1604 = vmatpush.bf16.msrb.mxu3 %v2754_v4  ;;  %1587 = vmatpush.bf16.msrb.mxu2 %v3066_v16  ;;  %v1514_v4 = vpack.c.bf16 %v1447_v6, %v1445_v11 }
 0x1f8   : > { %1605 = vmatpush.bf16.msrb.mxu3 %v2714_v30  ;;  %1588 = vmatpush.bf16.msrb.mxu2 %v3067_v45  ;;  %v1259_v30 = vpop.f32.mrf.mxu1 }
 0x1fb   : > { %1606 = vmatmul.bf16.vlgmr.msrb.gmra.mxu3 %v2827_v57 }
 0x1fc   : > { %1624 = vmatpush.bf16.msra.mxu3 %v1516_v41  ;;  %1589 = vmatpush.bf16.msrb.mxu2 %v3068_v39 }
 0x200   : > { %1625 = vmatpush.bf16.msra.mxu3 %v1514_v4  ;;  %1590 = vmatpush.bf16.msrb.mxu2 %v3069_v8  ;;  %v1261_v57 = vpop.f32.mrf.mxu1 }
 0x201   : > { %v1262_v15 = vadd.f32 %v1261_v57, %v3063_v36  ;;  %v1399_v36 = vmax.f32 %v1257_v3, 0.0 }
 0x203   : > { %v1403_v61 = vmax.f32 %v1262_v15, 0.0 }
 0x204   : > { %1626 = vmatpush.bf16.msra.mxu3 %v1512_v26  ;;  %1591 = vmatpush.bf16.msrb.mxu2 %v3070_v5 }
 0x208   : > { %1627 = vmatpush.bf16.msra.mxu3 %v2736_v7  ;;  %1592 = vmatpush.bf16.msrb.mxu2 %v3071_v59  ;;  %v1260_v7 = vadd.f32 %v1259_v30, %v3061_v60  ;;  %v1250_v60 = vadd.f32 %v2865_v43, %v3065_v1  ;;  %v1521_v43 = vpop.permute.xlu1 %1520 }
 0x209   : > { %v1543_v1 = vadd.f32 %v2837_v47, %v1521_v43 }
 0x20a   : > { %v1401_v25 = vmax.f32 %v1260_v7, 0.0  ;;  %v1393_v17 = vmax.f32 %v1250_v60, 0.0 }
 0x20b   : > { %1593 = vmatmul.bf16.vlgmr.msrb.gmra.mxu2 %v2752_v37  ;;  %v3077_v37 = vld [vmem:[#allocation46_spill] sm:$0xff] }
 0x20c   : > { %1628 = vmatpush.bf16.msra.mxu3 %v2687_v0  ;;  %1611 = vmatpush.bf16.msra.mxu2 %v3072_v56  ;;  %v3076_v0 = vld [vmem:[#allocation49_spill] sm:$0xff]  ;;  %v1492_v55 = vpack.c.bf16 %v1403_v61, %v1401_v25  ;;  %v1488_v14 = vpack.c.bf16 %v1395_v63, %v1393_v17 }
 0x210   : > { %1629 = vmatpush.bf16.msra.mxu3 %v2690_v21  ;;  %1612 = vmatpush.bf16.msra.mxu2 %v3073_v9  ;;  %v1255_v21 = vadd.f32 %v1254_v46, %v3064_v42 }
 0x212   : > { %v1397_v19 = vmax.f32 %v1255_v21, 0.0 }
 0x214   : > { %1630 = vmatpush.bf16.msra.mxu3 %v3074_v23  ;;  %1613 = vmatpush.bf16.msra.mxu2 %v3075_v31  ;;  %v1490_v42 = vpack.c.bf16 %v1399_v36, %v1397_v19 }
 0x218   : > { %1631 = vmatpush.bf16.msra.mxu3 %v3076_v0  ;;  %1614 = vmatpush.bf16.msra.mxu2 %v3077_v37 }
 0x21b   : > { %1632 = vmatmul.bf16.vlgmr.msra.gmra.mxu3 %v2857_v2  ;;  %v1391_v2 = vmax.f32 %v1247_v58, 0.0 }
 0x21c   : > { %1615 = vmatpush.bf16.msra.mxu2 %v1492_v55 }
 0x21d   : > { %v1486_v38 = vpack.c.bf16 %v1391_v2, %v1389_v24 }
 0x220   : > { %1616 = vmatpush.bf16.msra.mxu2 %v1490_v42 }
 0x224   : > { %1617 = vmatpush.bf16.msra.mxu2 %v1488_v14 }
 0x228   : > { %1618 = vmatpush.bf16.msra.mxu2 %v1486_v38 }
 0x22b   : > { %1619 = vmatmul.bf16.vlgmr.msra.gmra.mxu2 %v2884_v27 }
 0x23e   : > { %v1555_v51 = vpop.f32.mrf.mxu3 }
 0x23f   : > { %v1556_v18 = vadd.f32 %v1555_v51, %v1543_v1 }
 0x246   : > { %v1557_v35 = vpop.f32.mrf.mxu3 }
 0x25e   : > { %v1581_v13 = vpop.f32.mrf.mxu3 }
 0x266   : > { %v1583_v48 = vpop.f32.mrf.mxu3 }
 0x26e   : > { %v1568_v22 = vpop.f32.mrf.mxu2 }
 0x26f   : > { %v1569_v32 = vadd.f32 %v1568_v22, %v1556_v18 }
 0x271   : > { %v1582_v53 = vadd.f32 %v1581_v13, %v1569_v32 }
 0x276   : > { %v1570_v49 = vpop.f32.mrf.mxu2 }
 0x27e   : > { %v1607_v50 = vpop.f32.mrf.mxu3 }
 0x286   : > { %v1609_v29 = vpop.f32.mrf.mxu3 }
 0x28e   : > { %v1594_v46 = vpop.f32.mrf.mxu2 }
 0x28f   : > { %v1595_v27 = vadd.f32 %v1594_v46, %v1521_v43 }
 0x291   : > { %v1608_v12 = vadd.f32 %v1607_v50, %v1595_v27 }
 0x296   : > { %v1596_v62 = vpop.f32.mrf.mxu2 }
 0x29e   : > { %v1633_v40 = vpop.f32.mrf.mxu3 }
 0x2a6   : > { %v1635_v34 = vpop.f32.mrf.mxu3 }
 0x2ae   : > { %v1620_v54 = vpop.f32.mrf.mxu2 }
 0x2af   : > { %v1621_v47 = vadd.f32 %v1620_v54, %v1608_v12 }
 0x2b1   : > { %v1634_v6 = vadd.f32 %v1633_v40, %v1621_v47 }
 0x2b3   : > { %v1639_v41 = vrot.slane %v1634_v6, 6 }
 0x2b5   : > { %v1640_v16 = vsel %vm979_vm0, %v1582_v53, %v1639_v41 }
 0x2b6   : > { %1642 = vst [vmem:[%s262_s11] sm:$0xf] %v1640_v16  ;;  %v1622_v52 = vpop.f32.mrf.mxu2 }
 0x2b7 PF: > { %s15_s20 = sadd.s32 1, %s2019_s20   ;;  %s3078_s18 = smov %s2015_s19 }
 0x2b8   : > { %p12_p5 = scmp.ge.s32.totalorder %s15_s20, 4   ;;  %s3079_s19 = smov %s3081_s21 }
 0x2ba   :  { %14 = sbr.rel (!%p12_p5) target bundleno = 2 (0x2), region = 70 }

</bundles_post_ra>
